<compile_context>
chip_gen: v7x
topology: tpu7x:2x2x1
jax: 0.10.0
libtpu: 0.0.40
codegen_flags: <defaults>
</compile_context>

<pallas_src>
import functools

import numpy as np
import jax
import jax.numpy as jnp
from jax import lax
from jax.experimental import pallas as pl
from jax.experimental.pallas import tpu as pltpu

PRIMITIVES = ("none", "skip_connect", "nor_conv_1x1", "nor_conv_3x3", "avg_pool_3x3")
P = len(PRIMITIVES)

_PAD = 128   # lane halo for shifted-window loads (any value >= W+1, 128 keeps stores aligned)
_BLK = 11    # feature sub-blocks per state: [raw x, avg-pool, 9 conv taps]


# ----------------------------------------------------------------------------
# Pallas kernel: the whole cell for one batch element, layout (C, H*W)
# ----------------------------------------------------------------------------
def _cell_kernel(const_ref, x_ref, w_ref, o_ref, feat_ref, xpad_ref,
                 *, nodes, C, H, W):
    HW = H * W
    CB = _BLK * C

    # Zero halo of the padded-state buffer + bias row of the feature matrix.
    xpad_ref[:, 0:_PAD] = jnp.zeros((C, _PAD), jnp.float32)
    xpad_ref[:, _PAD + HW:_PAD + HW + _PAD] = jnp.zeros((C, _PAD), jnp.float32)
    feat_ref[0:1, :] = jnp.ones((1, HW), jnp.float32)

    def write_features(x, j):
        """im2col-style feature rows of state j: [x, avg_pool(x), relu(shift_t(x))]."""
        base = 1 + j * CB
        feat_ref[base:base + C, :] = x                       # raw state (skip path)
        xpad_ref[:, _PAD:_PAD + HW] = x
        psum = jnp.zeros((C, HW), jnp.float32)
        for t in range(9):
            dh, dw = divmod(t, 3)
            delta = (dh - 1) * W + (dw - 1)
            if t == 4:
                shifted = x
            else:
                shifted = xpad_ref[:, _PAD + delta:_PAD + delta + HW]
                if dw != 1:                                  # mask w-edge wraparound
                    shifted = shifted * const_ref[t:t + 1, :]
            psum = psum + shifted
            feat_ref[base + (2 + t) * C:base + (3 + t) * C, :] = jnp.maximum(shifted, 0.0)
        # avg_pool_3x3 (stride 1, pad 1, count_include_pad=False): precomputed 1/count
        feat_ref[base + C:base + 2 * C, :] = psum * const_ref[9:10, :]

    s = x_ref[0]                                             # (C, HW) input state 0
    write_features(s, 0)
    for i in range(nodes - 1):
        K = 1 + (i + 1) * CB
        # ONE big-K matmul per node: skip + pool + 1x1 + 3x3 + bias, all folded.
        s = jnp.dot(w_ref[i, :, :K], feat_ref[0:K, :],
                    preferred_element_type=jnp.float32)      # (C, HW), lane-dense
        if i < nodes - 2:
            write_features(s, i + 1)
    o_ref[0] = s


# ----------------------------------------------------------------------------
# Host-side constant / weight preparation
# ----------------------------------------------------------------------------
def _build_const(H, W):
    """Rows 0..8: validity mask per 3x3 tap; row 9: 1/count for the avg pool."""
    hh, ww = np.meshgrid(np.arange(H), np.arange(W), indexing="ij")
    rows = []
    for t in range(9):
        dh, dw = divmod(t, 3)
        valid = ((hh + dh - 1 >= 0) & (hh + dh - 1 < H) &
                 (ww + dw - 1 >= 0) & (ww + dw - 1 < W))
        rows.append(valid.astype(np.float32).reshape(-1))
    masks = np.stack(rows)                                   # (9, H*W)
    inv_cnt = 1.0 / masks.sum(axis=0, keepdims=True)         # (1, H*W)
    return jnp.asarray(np.concatenate([masks, inv_cnt], axis=0).astype(np.float32))


def _fold_params(arch_weights, params, nodes, C):
    """Fold arch weights + inference-mode BN into one (C, Kmax) matrix per node.

    Column layout (matching the kernel's feature matrix):
      col 0                    : bias (multiplies the constant ones row)
      cols 1 + j*11C + [0 :C)  : skip_connect   -> a_skip * I
      cols 1 + j*11C + [C:2C)  : avg_pool_3x3   -> diag(a_pool * bn_scale_pool)
      cols 1 + j*11C + (2+t)*C : conv tap t     -> a_c3 * bn_scale_c3 * W3[..t..]
                                                   (+ a_c1 * bn_scale_c1 * W1 at t=4)
    """
    E = nodes - 1
    CB = _BLK * C
    Kmax = 1 + (nodes - 1) * CB
    a = arch_weights.astype(jnp.float32)         # (E, nodes, P)
    w1 = params["w1"]                            # (E, nodes, Cout, Cin)
    w3 = params["w3"]                            # (E, nodes, Cout, Cin, 3, 3)
    sc = params["bn_scale"]                      # (E, nodes, 3, Cout)
    bi = params["bn_bias"]                       # (E, nodes, 3, Cout)
    eye = jnp.eye(C, dtype=jnp.float32)

    skip_blk = a[..., 1, None, None] * eye                                   # (E,N,C,C)
    pool_blk = (a[..., 4, None] * sc[:, :, 2])[..., None] * eye              # diag
    w3_t = jnp.transpose(w3, (0, 1, 2, 4, 5, 3)).reshape(E, nodes, C, 9, C)  # tap = kh*3+kw
    conv_blk = a[..., 3, None, None, None] * sc[:, :, 1, :, None, None] * w3_t
    center = a[..., 2, None, None] * sc[:, :, 0, :, None] * w1
    conv_blk = conv_blk.at[:, :, :, 4, :].add(center)
    edge_blk = jnp.concatenate(
        [skip_blk[:, :, :, None, :], pool_blk[:, :, :, None, :], conv_blk],
        axis=3).reshape(E, nodes, C, CB)                                     # (E,N,C,11C)
    edge_bias = (a[..., 2, None] * bi[:, :, 0] + a[..., 3, None] * bi[:, :, 1]
                 + a[..., 4, None] * bi[:, :, 2])                            # (E,N,C)

    w_node = jnp.zeros((E, C, Kmax), jnp.float32)
    for i in range(E):
        blk = jnp.transpose(edge_blk[i, :i + 1], (1, 0, 2)).reshape(C, (i + 1) * CB)
        w_node = w_node.at[i, :, 0].set(edge_bias[i, :i + 1].sum(axis=0))
        w_node = w_node.at[i, :, 1:1 + (i + 1) * CB].set(blk)
    return w_node


# ----------------------------------------------------------------------------
# NormalCell forward (NCHW in, NCHW out)
# ----------------------------------------------------------------------------
def normal_cell_forward(x_nchw, arch_weights, params):
    B, C, H, W = x_nchw.shape
    nodes = arch_weights.shape[0] + 1
    HW = H * W
    CB = _BLK * C
    Kmax = 1 + (nodes - 1) * CB

    const = _build_const(H, W)                               # (10, HW)
    w_node = _fold_params(arch_weights, params, nodes, C)    # (E, C, Kmax)
    x_flat = x_nchw.reshape(B, C, HW)

    kernel = functools.partial(_cell_kernel, nodes=nodes, C=C, H=H, W=W)
    out = pl.pallas_call(
        kernel,
        out_shape=jax.ShapeDtypeStruct((B, C, HW), jnp.float32),
        grid_spec=pltpu.PrefetchScalarGridSpec(
            num_scalar_prefetch=0,
            grid=(B,),
            in_specs=[
                pl.BlockSpec((10, HW), lambda b: (0, 0)),                 # masks / 1/cnt
                pl.BlockSpec((1, C, HW), lambda b: (b, 0, 0)),            # input state
                pl.BlockSpec((nodes - 1, C, Kmax), lambda b: (0, 0, 0)),  # folded weights
            ],
            out_specs=pl.BlockSpec((1, C, HW), lambda b: (b, 0, 0)),
            scratch_shapes=[
                pltpu.VMEM((Kmax, HW), jnp.float32),               # shared feature matrix
                pltpu.VMEM((C, 2 * _PAD + HW), jnp.float32),       # zero-haloed state buf
            ],
        ),
        compiler_params=pltpu.CompilerParams(
            dimension_semantics=("parallel",)),
    )(const, x_flat, w_node)
    return out.reshape(B, C, H, W)


# ----------------------------------------------------------------------------
# Deterministic parameter init (shapes follow MixedOp.__init__ / OPS)
# ----------------------------------------------------------------------------
def init_params(key, nodes, C):
    k1, k2, k3, k4, k5, k6 = jax.random.split(key, 6)
    E = nodes - 1
    w1 = jax.random.normal(k1, (E, nodes, C, C), jnp.float32) / np.sqrt(C)           # (out,in)
    w3 = jax.random.normal(k2, (E, nodes, C, C, 3, 3), jnp.float32) / np.sqrt(9 * C)  # (out,in,kh,kw)
    gamma = 1.0 + 0.1 * jax.random.normal(k3, (E, nodes, 3, C), jnp.float32)
    beta = 0.1 * jax.random.normal(k4, (E, nodes, 3, C), jnp.float32)
    mean = 0.1 * jax.random.normal(k5, (E, nodes, 3, C), jnp.float32)
    var = jnp.abs(1.0 + 0.1 * jax.random.normal(k6, (E, nodes, 3, C), jnp.float32))
    eps = 1e-5
    scale = gamma / jnp.sqrt(var + eps)          # folded inference-mode BN
    bias = beta - mean * scale
    return dict(w1=w1, w3=w3, bn_scale=scale, bn_bias=bias)


# ----------------------------------------------------------------------------
# Pure-JAX reference (correctness check only), NCHW
# ----------------------------------------------------------------------------
def _mixed_op_ref(x, mw, w1, w3, scale, bias):
    r = jnp.maximum(x, 0.0)
    c1 = jnp.einsum("bihw,oi->bohw", r, w1, precision=lax.Precision.HIGHEST)
    c1 = c1 * scale[0][None, :, None, None] + bias[0][None, :, None, None]
    c3 = lax.conv_general_dilated(
        r, w3, window_strides=(1, 1), padding=((1, 1), (1, 1)),
        dimension_numbers=("NCHW", "OIHW", "NCHW"),
        precision=lax.Precision.HIGHEST)
    c3 = c3 * scale[1][None, :, None, None] + bias[1][None, :, None, None]
    win, stride = (1, 1, 3, 3), (1, 1, 1, 1)
    pad = ((0, 0), (0, 0), (1, 1), (1, 1))
    ssum = lax.reduce_window(x, 0.0, lax.add, win, stride, pad)
    cnt = lax.reduce_window(jnp.ones_like(x), 0.0, lax.add, win, stride, pad)
    pool = (ssum / cnt) * scale[2][None, :, None, None] + bias[2][None, :, None, None]
    return mw[1] * x + mw[2] * c1 + mw[3] * c3 + mw[4] * pool


def normal_cell_ref(x, arch_weights, params):
    nodes = arch_weights.shape[0] + 1
    states = [x]
    for i in range(nodes - 1):
        s = jnp.zeros_like(x)
        for j, h in enumerate(states):
            s = s + _mixed_op_ref(h, arch_weights[i, j], params["w1"][i, j],
                                  params["w3"][i, j], params["bn_scale"][i, j],
                                  params["bn_bias"][i, j])
        states.append(s)
    return states[-1]


if __name__ == "__main__":
    B, C, H, W = 2, 4, 16, 16
    nodes = 4

    key = jax.random.PRNGKey(0)
    kx, kw, kp = jax.random.split(key, 3)
    x = jax.random.normal(kx, (B, C, H, W), jnp.float32)             # PyTorch NCHW
    arch_weights = jax.nn.softmax(
        jax.random.normal(kw, (nodes - 1, nodes, P), jnp.float32), axis=-1)
    params = init_params(kp, nodes, C)

    fwd = jax.jit(normal_cell_forward)
    out = fwd(x, arch_weights, params)
    jax.block_until_ready(out)

    ref = normal_cell_ref(x, arch_weights, params)
    np.testing.assert_allclose(np.asarray(out), np.asarray(ref),
                               rtol=1e-2, atol=1e-2)
    print("KERNEL_OK")
</pallas_src>

<mosaic_0001>
module attributes {stable_mosaic.version = 11 : i64} {
  func.func @_cell_kernel(%arg0: i32, %arg1: memref<10x256xf32, #tpu.memory_space<vmem>>, %arg2: memref<1x4x256xf32, #tpu.memory_space<vmem>>, %arg3: memref<3x4x133xf32, #tpu.memory_space<vmem>>, %arg4: memref<1x4x256xf32, #tpu.memory_space<vmem>>, %arg5: memref<133x256xf32, #tpu.memory_space<vmem>>, %arg6: memref<4x512xf32, #tpu.memory_space<vmem>>) attributes {dimension_semantics = [#tpu.dimension_semantics<parallel>], iteration_bounds = array<i64: 2>, scalar_prefetch = 0 : i64, scratch_operands = 2 : i64, tpu.core_type = #tpu.core_type<tc>, window_params = [{pipeline_mode = #tpu.pipeline_mode<synchronous>, transform_indices = @transform_0, window_bounds = array<i64: 10, 256>}, {transform_indices = @transform_1, window_bounds = array<i64: 1, 4, 256>}, {pipeline_mode = #tpu.pipeline_mode<synchronous>, transform_indices = @transform_2, window_bounds = array<i64: 3, 4, 133>}, {transform_indices = @transform_3, window_bounds = array<i64: 1, 4, 256>}]} {
    %cst = arith.constant 0.000000e+00 : f32
    %0 = vector.broadcast %cst : f32 to vector<4x128xf32>
    %c0 = arith.constant 0 : index
    %c0_0 = arith.constant 0 : index
    %1 = vector.load %arg6[%c0, %c0_0] : memref<4x512xf32, #tpu.memory_space<vmem>>, vector<4x128xf32>
    tpu.vector_store %arg6[%c0, %c0_0], %0 {strides = array<i32>} : memref<4x512xf32, #tpu.memory_space<vmem>>, vector<4x128xf32>,
    %cst_1 = arith.constant 0.000000e+00 : f32
    %2 = vector.broadcast %cst_1 : f32 to vector<4x128xf32>
    %c0_2 = arith.constant 0 : index
    %c384 = arith.constant 384 : index
    %3 = vector.load %arg6[%c0_2, %c384] : memref<4x512xf32, #tpu.memory_space<vmem>>, vector<4x128xf32>
    tpu.vector_store %arg6[%c0_2, %c384], %2 {strides = array<i32>} : memref<4x512xf32, #tpu.memory_space<vmem>>, vector<4x128xf32>,
    %cst_3 = arith.constant 1.000000e+00 : f32
    %4 = vector.broadcast %cst_3 : f32 to vector<1x256xf32>
    %c0_4 = arith.constant 0 : index
    %c0_5 = arith.constant 0 : index
    %5 = vector.load %arg5[%c0_4, %c0_5] : memref<133x256xf32, #tpu.memory_space<vmem>>, vector<1x256xf32>
    tpu.vector_store %arg5[%c0_4, %c0_5], %4 {strides = array<i32>} : memref<133x256xf32, #tpu.memory_space<vmem>>, vector<1x256xf32>,
    %c0_6 = arith.constant 0 : index
    %c0_7 = arith.constant 0 : index
    %c0_8 = arith.constant 0 : index
    %6 = vector.load %arg2[%c0_6, %c0_7, %c0_8] : memref<1x4x256xf32, #tpu.memory_space<vmem>>, vector<1x4x256xf32>
    %7 = vector.shape_cast %6 : vector<1x4x256xf32> to vector<4x256xf32>
    %c1 = arith.constant 1 : index
    %c0_9 = arith.constant 0 : index
    %8 = vector.load %arg5[%c1, %c0_9] : memref<133x256xf32, #tpu.memory_space<vmem>>, vector<4x256xf32>
    tpu.vector_store %arg5[%c1, %c0_9], %7 {strides = array<i32>} : memref<133x256xf32, #tpu.memory_space<vmem>>, vector<4x256xf32>,
    %c0_10 = arith.constant 0 : index
    %c128 = arith.constant 128 : index
    %9 = vector.load %arg6[%c0_10, %c128] : memref<4x512xf32, #tpu.memory_space<vmem>>, vector<4x256xf32>
    tpu.vector_store %arg6[%c0_10, %c128], %7 {strides = array<i32>} : memref<4x512xf32, #tpu.memory_space<vmem>>, vector<4x256xf32>,
    %cst_11 = arith.constant 0.000000e+00 : f32
    %10 = vector.broadcast %cst_11 : f32 to vector<4x256xf32>
    %c0_12 = arith.constant 0 : index
    %c111 = arith.constant 111 : index
    %11 = vector.load %arg6[%c0_12, %c111] : memref<4x512xf32, #tpu.memory_space<vmem>>, vector<4x256xf32>
    %c0_13 = arith.constant 0 : index
    %c0_14 = arith.constant 0 : index
    %12 = vector.load %arg1[%c0_13, %c0_14] : memref<10x256xf32, #tpu.memory_space<vmem>>, vector<1x256xf32>
    %13 = vector.broadcast %12 : vector<1x256xf32> to vector<4x256xf32>
    %14 = arith.mulf %11, %13 : vector<4x256xf32>
    %15 = arith.addf %10, %14 : vector<4x256xf32>
    %cst_15 = arith.constant 0.000000e+00 : f32
    %16 = vector.broadcast %cst_15 : f32 to vector<4x256xf32>
    %17 = arith.maximumf %14, %16 : vector<4x256xf32>
    %c9 = arith.constant 9 : index
    %c0_16 = arith.constant 0 : index
    %18 = vector.load %arg5[%c9, %c0_16] : memref<133x256xf32, #tpu.memory_space<vmem>>, vector<4x256xf32>
    tpu.vector_store %arg5[%c9, %c0_16], %17 {strides = array<i32>} : memref<133x256xf32, #tpu.memory_space<vmem>>, vector<4x256xf32>,
    %c0_17 = arith.constant 0 : index
    %c112 = arith.constant 112 : index
    %19 = vector.load %arg6[%c0_17, %c112] : memref<4x512xf32, #tpu.memory_space<vmem>>, vector<4x256xf32>
    %20 = arith.addf %15, %19 : vector<4x256xf32>
    %cst_18 = arith.constant 0.000000e+00 : f32
    %21 = vector.broadcast %cst_18 : f32 to vector<4x256xf32>
    %22 = arith.maximumf %19, %21 : vector<4x256xf32>
    %c13 = arith.constant 13 : index
    %c0_19 = arith.constant 0 : index
    %23 = vector.load %arg5[%c13, %c0_19] : memref<133x256xf32, #tpu.memory_space<vmem>>, vector<4x256xf32>
    tpu.vector_store %arg5[%c13, %c0_19], %22 {strides = array<i32>} : memref<133x256xf32, #tpu.memory_space<vmem>>, vector<4x256xf32>,
    %c0_20 = arith.constant 0 : index
    %c113 = arith.constant 113 : index
    %24 = vector.load %arg6[%c0_20, %c113] : memref<4x512xf32, #tpu.memory_space<vmem>>, vector<4x256xf32>
    %c2 = arith.constant 2 : index
    %c0_21 = arith.constant 0 : index
    %25 = vector.load %arg1[%c2, %c0_21] : memref<10x256xf32, #tpu.memory_space<vmem>>, vector<1x256xf32>
    %26 = vector.broadcast %25 : vector<1x256xf32> to vector<4x256xf32>
    %27 = arith.mulf %24, %26 : vector<4x256xf32>
    %28 = arith.addf %20, %27 : vector<4x256xf32>
    %cst_22 = arith.constant 0.000000e+00 : f32
    %29 = vector.broadcast %cst_22 : f32 to vector<4x256xf32>
    %30 = arith.maximumf %27, %29 : vector<4x256xf32>
    %c17 = arith.constant 17 : index
    %c0_23 = arith.constant 0 : index
    %31 = vector.load %arg5[%c17, %c0_23] : memref<133x256xf32, #tpu.memory_space<vmem>>, vector<4x256xf32>
    tpu.vector_store %arg5[%c17, %c0_23], %30 {strides = array<i32>} : memref<133x256xf32, #tpu.memory_space<vmem>>, vector<4x256xf32>,
    %c0_24 = arith.constant 0 : index
    %c127 = arith.constant 127 : index
    %32 = vector.load %arg6[%c0_24, %c127] : memref<4x512xf32, #tpu.memory_space<vmem>>, vector<4x256xf32>
    %c3 = arith.constant 3 : index
    %c0_25 = arith.constant 0 : index
    %33 = vector.load %arg1[%c3, %c0_25] : memref<10x256xf32, #tpu.memory_space<vmem>>, vector<1x256xf32>
    %34 = vector.broadcast %33 : vector<1x256xf32> to vector<4x256xf32>
    %35 = arith.mulf %32, %34 : vector<4x256xf32>
    %36 = arith.addf %28, %35 : vector<4x256xf32>
    %cst_26 = arith.constant 0.000000e+00 : f32
    %37 = vector.broadcast %cst_26 : f32 to vector<4x256xf32>
    %38 = arith.maximumf %35, %37 : vector<4x256xf32>
    %c21 = arith.constant 21 : index
    %c0_27 = arith.constant 0 : index
    %39 = vector.load %arg5[%c21, %c0_27] : memref<133x256xf32, #tpu.memory_space<vmem>>, vector<4x256xf32>
    tpu.vector_store %arg5[%c21, %c0_27], %38 {strides = array<i32>} : memref<133x256xf32, #tpu.memory_space<vmem>>, vector<4x256xf32>,
    %40 = arith.addf %36, %7 : vector<4x256xf32>
    %cst_28 = arith.constant 0.000000e+00 : f32
    %41 = vector.broadcast %cst_28 : f32 to vector<4x256xf32>
    %42 = arith.maximumf %7, %41 : vector<4x256xf32>
    %c25 = arith.constant 25 : index
    %c0_29 = arith.constant 0 : index
    %43 = vector.load %arg5[%c25, %c0_29] : memref<133x256xf32, #tpu.memory_space<vmem>>, vector<4x256xf32>
    tpu.vector_store %arg5[%c25, %c0_29], %42 {strides = array<i32>} : memref<133x256xf32, #tpu.memory_space<vmem>>, vector<4x256xf32>,
    %c0_30 = arith.constant 0 : index
    %c129 = arith.constant 129 : index
    %44 = vector.load %arg6[%c0_30, %c129] : memref<4x512xf32, #tpu.memory_space<vmem>>, vector<4x256xf32>
    %c5 = arith.constant 5 : index
    %c0_31 = arith.constant 0 : index
    %45 = vector.load %arg1[%c5, %c0_31] : memref<10x256xf32, #tpu.memory_space<vmem>>, vector<1x256xf32>
    %46 = vector.broadcast %45 : vector<1x256xf32> to vector<4x256xf32>
    %47 = arith.mulf %44, %46 : vector<4x256xf32>
    %48 = arith.addf %40, %47 : vector<4x256xf32>
    %cst_32 = arith.constant 0.000000e+00 : f32
    %49 = vector.broadcast %cst_32 : f32 to vector<4x256xf32>
    %50 = arith.maximumf %47, %49 : vector<4x256xf32>
    %c29 = arith.constant 29 : index
    %c0_33 = arith.constant 0 : index
    %51 = vector.load %arg5[%c29, %c0_33] : memref<133x256xf32, #tpu.memory_space<vmem>>, vector<4x256xf32>
    tpu.vector_store %arg5[%c29, %c0_33], %50 {strides = array<i32>} : memref<133x256xf32, #tpu.memory_space<vmem>>, vector<4x256xf32>,
    %c0_34 = arith.constant 0 : index
    %c143 = arith.constant 143 : index
    %52 = vector.load %arg6[%c0_34, %c143] : memref<4x512xf32, #tpu.memory_space<vmem>>, vector<4x256xf32>
    %c6 = arith.constant 6 : index
    %c0_35 = arith.constant 0 : index
    %53 = vector.load %arg1[%c6, %c0_35] : memref<10x256xf32, #tpu.memory_space<vmem>>, vector<1x256xf32>
    %54 = vector.broadcast %53 : vector<1x256xf32> to vector<4x256xf32>
    %55 = arith.mulf %52, %54 : vector<4x256xf32>
    %56 = arith.addf %48, %55 : vector<4x256xf32>
    %cst_36 = arith.constant 0.000000e+00 : f32
    %57 = vector.broadcast %cst_36 : f32 to vector<4x256xf32>
    %58 = arith.maximumf %55, %57 : vector<4x256xf32>
    %c33 = arith.constant 33 : index
    %c0_37 = arith.constant 0 : index
    %59 = vector.load %arg5[%c33, %c0_37] : memref<133x256xf32, #tpu.memory_space<vmem>>, vector<4x256xf32>
    tpu.vector_store %arg5[%c33, %c0_37], %58 {strides = array<i32>} : memref<133x256xf32, #tpu.memory_space<vmem>>, vector<4x256xf32>,
    %c0_38 = arith.constant 0 : index
    %c144 = arith.constant 144 : index
    %60 = vector.load %arg6[%c0_38, %c144] : memref<4x512xf32, #tpu.memory_space<vmem>>, vector<4x256xf32>
    %61 = arith.addf %56, %60 : vector<4x256xf32>
    %cst_39 = arith.constant 0.000000e+00 : f32
    %62 = vector.broadcast %cst_39 : f32 to vector<4x256xf32>
    %63 = arith.maximumf %60, %62 : vector<4x256xf32>
    %c37 = arith.constant 37 : index
    %c0_40 = arith.constant 0 : index
    %64 = vector.load %arg5[%c37, %c0_40] : memref<133x256xf32, #tpu.memory_space<vmem>>, vector<4x256xf32>
    tpu.vector_store %arg5[%c37, %c0_40], %63 {strides = array<i32>} : memref<133x256xf32, #tpu.memory_space<vmem>>, vector<4x256xf32>,
    %c0_41 = arith.constant 0 : index
    %c145 = arith.constant 145 : index
    %65 = vector.load %arg6[%c0_41, %c145] : memref<4x512xf32, #tpu.memory_space<vmem>>, vector<4x256xf32>
    %c8 = arith.constant 8 : index
    %c0_42 = arith.constant 0 : index
    %66 = vector.load %arg1[%c8, %c0_42] : memref<10x256xf32, #tpu.memory_space<vmem>>, vector<1x256xf32>
    %67 = vector.broadcast %66 : vector<1x256xf32> to vector<4x256xf32>
    %68 = arith.mulf %65, %67 : vector<4x256xf32>
    %69 = arith.addf %61, %68 : vector<4x256xf32>
    %cst_43 = arith.constant 0.000000e+00 : f32
    %70 = vector.broadcast %cst_43 : f32 to vector<4x256xf32>
    %71 = arith.maximumf %68, %70 : vector<4x256xf32>
    %c41 = arith.constant 41 : index
    %c0_44 = arith.constant 0 : index
    %72 = vector.load %arg5[%c41, %c0_44] : memref<133x256xf32, #tpu.memory_space<vmem>>, vector<4x256xf32>
    tpu.vector_store %arg5[%c41, %c0_44], %71 {strides = array<i32>} : memref<133x256xf32, #tpu.memory_space<vmem>>, vector<4x256xf32>,
    %c9_45 = arith.constant 9 : index
    %c0_46 = arith.constant 0 : index
    %73 = vector.load %arg1[%c9_45, %c0_46] : memref<10x256xf32, #tpu.memory_space<vmem>>, vector<1x256xf32>
    %74 = vector.broadcast %73 : vector<1x256xf32> to vector<4x256xf32>
    %75 = arith.mulf %69, %74 : vector<4x256xf32>
    %c5_47 = arith.constant 5 : index
    %c0_48 = arith.constant 0 : index
    %76 = vector.load %arg5[%c5_47, %c0_48] : memref<133x256xf32, #tpu.memory_space<vmem>>, vector<4x256xf32>
    tpu.vector_store %arg5[%c5_47, %c0_48], %75 {strides = array<i32>} : memref<133x256xf32, #tpu.memory_space<vmem>>, vector<4x256xf32>,
    %c0_49 = arith.constant 0 : index
    %c0_50 = arith.constant 0 : index
    %c0_51 = arith.constant 0 : index
    %77 = vector.load %arg3[%c0_49, %c0_50, %c0_51] : memref<3x4x133xf32, #tpu.memory_space<vmem>>, vector<1x4x45xf32>
    %78 = vector.shape_cast %77 : vector<1x4x45xf32> to vector<4x45xf32>
    %c0_52 = arith.constant 0 : index
    %c0_53 = arith.constant 0 : index
    %79 = vector.load %arg5[%c0_52, %c0_53] : memref<133x256xf32, #tpu.memory_space<vmem>>, vector<45x256xf32>
    %cst_54 = arith.constant dense<0.000000e+00> : vector<4x256xf32>
    %80 = tpu.matmul %78, %79, %cst_54 {dimension_numbers = #tpu.dot_dimension_numbers<[1], [0], [0], [1], [0, 0, 1, 1], [], []>} : vector<4x45xf32>, vector<45x256xf32>, vector<4x256xf32> -> vector<4x256xf32>
    %c45 = arith.constant 45 : index
    %c0_55 = arith.constant 0 : index
    %81 = vector.load %arg5[%c45, %c0_55] : memref<133x256xf32, #tpu.memory_space<vmem>>, vector<4x256xf32>
    tpu.vector_store %arg5[%c45, %c0_55], %80 {strides = array<i32>} : memref<133x256xf32, #tpu.memory_space<vmem>>, vector<4x256xf32>,
    %c0_56 = arith.constant 0 : index
    %c128_57 = arith.constant 128 : index
    %82 = vector.load %arg6[%c0_56, %c128_57] : memref<4x512xf32, #tpu.memory_space<vmem>>, vector<4x256xf32>
    tpu.vector_store %arg6[%c0_56, %c128_57], %80 {strides = array<i32>} : memref<4x512xf32, #tpu.memory_space<vmem>>, vector<4x256xf32>,
    %cst_58 = arith.constant 0.000000e+00 : f32
    %83 = vector.broadcast %cst_58 : f32 to vector<4x256xf32>
    %c0_59 = arith.constant 0 : index
    %c111_60 = arith.constant 111 : index
    %84 = vector.load %arg6[%c0_59, %c111_60] : memref<4x512xf32, #tpu.memory_space<vmem>>, vector<4x256xf32>
    %c0_61 = arith.constant 0 : index
    %c0_62 = arith.constant 0 : index
    %85 = vector.load %arg1[%c0_61, %c0_62] : memref<10x256xf32, #tpu.memory_space<vmem>>, vector<1x256xf32>
    %86 = vector.broadcast %85 : vector<1x256xf32> to vector<4x256xf32>
    %87 = arith.mulf %84, %86 : vector<4x256xf32>
    %88 = arith.addf %83, %87 : vector<4x256xf32>
    %cst_63 = arith.constant 0.000000e+00 : f32
    %89 = vector.broadcast %cst_63 : f32 to vector<4x256xf32>
    %90 = arith.maximumf %87, %89 : vector<4x256xf32>
    %c53 = arith.constant 53 : index
    %c0_64 = arith.constant 0 : index
    %91 = vector.load %arg5[%c53, %c0_64] : memref<133x256xf32, #tpu.memory_space<vmem>>, vector<4x256xf32>
    tpu.vector_store %arg5[%c53, %c0_64], %90 {strides = array<i32>} : memref<133x256xf32, #tpu.memory_space<vmem>>, vector<4x256xf32>,
    %c0_65 = arith.constant 0 : index
    %c112_66 = arith.constant 112 : index
    %92 = vector.load %arg6[%c0_65, %c112_66] : memref<4x512xf32, #tpu.memory_space<vmem>>, vector<4x256xf32>
    %93 = arith.addf %88, %92 : vector<4x256xf32>
    %cst_67 = arith.constant 0.000000e+00 : f32
    %94 = vector.broadcast %cst_67 : f32 to vector<4x256xf32>
    %95 = arith.maximumf %92, %94 : vector<4x256xf32>
    %c57 = arith.constant 57 : index
    %c0_68 = arith.constant 0 : index
    %96 = vector.load %arg5[%c57, %c0_68] : memref<133x256xf32, #tpu.memory_space<vmem>>, vector<4x256xf32>
    tpu.vector_store %arg5[%c57, %c0_68], %95 {strides = array<i32>} : memref<133x256xf32, #tpu.memory_space<vmem>>, vector<4x256xf32>,
    %c0_69 = arith.constant 0 : index
    %c113_70 = arith.constant 113 : index
    %97 = vector.load %arg6[%c0_69, %c113_70] : memref<4x512xf32, #tpu.memory_space<vmem>>, vector<4x256xf32>
    %c2_71 = arith.constant 2 : index
    %c0_72 = arith.constant 0 : index
    %98 = vector.load %arg1[%c2_71, %c0_72] : memref<10x256xf32, #tpu.memory_space<vmem>>, vector<1x256xf32>
    %99 = vector.broadcast %98 : vector<1x256xf32> to vector<4x256xf32>
    %100 = arith.mulf %97, %99 : vector<4x256xf32>
    %101 = arith.addf %93, %100 : vector<4x256xf32>
    %cst_73 = arith.constant 0.000000e+00 : f32
    %102 = vector.broadcast %cst_73 : f32 to vector<4x256xf32>
    %103 = arith.maximumf %100, %102 : vector<4x256xf32>
    %c61 = arith.constant 61 : index
    %c0_74 = arith.constant 0 : index
    %104 = vector.load %arg5[%c61, %c0_74] : memref<133x256xf32, #tpu.memory_space<vmem>>, vector<4x256xf32>
    tpu.vector_store %arg5[%c61, %c0_74], %103 {strides = array<i32>} : memref<133x256xf32, #tpu.memory_space<vmem>>, vector<4x256xf32>,
    %c0_75 = arith.constant 0 : index
    %c127_76 = arith.constant 127 : index
    %105 = vector.load %arg6[%c0_75, %c127_76] : memref<4x512xf32, #tpu.memory_space<vmem>>, vector<4x256xf32>
    %c3_77 = arith.constant 3 : index
    %c0_78 = arith.constant 0 : index
    %106 = vector.load %arg1[%c3_77, %c0_78] : memref<10x256xf32, #tpu.memory_space<vmem>>, vector<1x256xf32>
    %107 = vector.broadcast %106 : vector<1x256xf32> to vector<4x256xf32>
    %108 = arith.mulf %105, %107 : vector<4x256xf32>
    %109 = arith.addf %101, %108 : vector<4x256xf32>
    %cst_79 = arith.constant 0.000000e+00 : f32
    %110 = vector.broadcast %cst_79 : f32 to vector<4x256xf32>
    %111 = arith.maximumf %108, %110 : vector<4x256xf32>
    %c65 = arith.constant 65 : index
    %c0_80 = arith.constant 0 : index
    %112 = vector.load %arg5[%c65, %c0_80] : memref<133x256xf32, #tpu.memory_space<vmem>>, vector<4x256xf32>
    tpu.vector_store %arg5[%c65, %c0_80], %111 {strides = array<i32>} : memref<133x256xf32, #tpu.memory_space<vmem>>, vector<4x256xf32>,
    %113 = arith.addf %109, %80 : vector<4x256xf32>
    %cst_81 = arith.constant 0.000000e+00 : f32
    %114 = vector.broadcast %cst_81 : f32 to vector<4x256xf32>
    %115 = arith.maximumf %80, %114 : vector<4x256xf32>
    %c69 = arith.constant 69 : index
    %c0_82 = arith.constant 0 : index
    %116 = vector.load %arg5[%c69, %c0_82] : memref<133x256xf32, #tpu.memory_space<vmem>>, vector<4x256xf32>
    tpu.vector_store %arg5[%c69, %c0_82], %115 {strides = array<i32>} : memref<133x256xf32, #tpu.memory_space<vmem>>, vector<4x256xf32>,
    %c0_83 = arith.constant 0 : index
    %c129_84 = arith.constant 129 : index
    %117 = vector.load %arg6[%c0_83, %c129_84] : memref<4x512xf32, #tpu.memory_space<vmem>>, vector<4x256xf32>
    %c5_85 = arith.constant 5 : index
    %c0_86 = arith.constant 0 : index
    %118 = vector.load %arg1[%c5_85, %c0_86] : memref<10x256xf32, #tpu.memory_space<vmem>>, vector<1x256xf32>
    %119 = vector.broadcast %118 : vector<1x256xf32> to vector<4x256xf32>
    %120 = arith.mulf %117, %119 : vector<4x256xf32>
    %121 = arith.addf %113, %120 : vector<4x256xf32>
    %cst_87 = arith.constant 0.000000e+00 : f32
    %122 = vector.broadcast %cst_87 : f32 to vector<4x256xf32>
    %123 = arith.maximumf %120, %122 : vector<4x256xf32>
    %c73 = arith.constant 73 : index
    %c0_88 = arith.constant 0 : index
    %124 = vector.load %arg5[%c73, %c0_88] : memref<133x256xf32, #tpu.memory_space<vmem>>, vector<4x256xf32>
    tpu.vector_store %arg5[%c73, %c0_88], %123 {strides = array<i32>} : memref<133x256xf32, #tpu.memory_space<vmem>>, vector<4x256xf32>,
    %c0_89 = arith.constant 0 : index
    %c143_90 = arith.constant 143 : index
    %125 = vector.load %arg6[%c0_89, %c143_90] : memref<4x512xf32, #tpu.memory_space<vmem>>, vector<4x256xf32>
    %c6_91 = arith.constant 6 : index
    %c0_92 = arith.constant 0 : index
    %126 = vector.load %arg1[%c6_91, %c0_92] : memref<10x256xf32, #tpu.memory_space<vmem>>, vector<1x256xf32>
    %127 = vector.broadcast %126 : vector<1x256xf32> to vector<4x256xf32>
    %128 = arith.mulf %125, %127 : vector<4x256xf32>
    %129 = arith.addf %121, %128 : vector<4x256xf32>
    %cst_93 = arith.constant 0.000000e+00 : f32
    %130 = vector.broadcast %cst_93 : f32 to vector<4x256xf32>
    %131 = arith.maximumf %128, %130 : vector<4x256xf32>
    %c77 = arith.constant 77 : index
    %c0_94 = arith.constant 0 : index
    %132 = vector.load %arg5[%c77, %c0_94] : memref<133x256xf32, #tpu.memory_space<vmem>>, vector<4x256xf32>
    tpu.vector_store %arg5[%c77, %c0_94], %131 {strides = array<i32>} : memref<133x256xf32, #tpu.memory_space<vmem>>, vector<4x256xf32>,
    %c0_95 = arith.constant 0 : index
    %c144_96 = arith.constant 144 : index
    %133 = vector.load %arg6[%c0_95, %c144_96] : memref<4x512xf32, #tpu.memory_space<vmem>>, vector<4x256xf32>
    %134 = arith.addf %129, %133 : vector<4x256xf32>
    %cst_97 = arith.constant 0.000000e+00 : f32
    %135 = vector.broadcast %cst_97 : f32 to vector<4x256xf32>
    %136 = arith.maximumf %133, %135 : vector<4x256xf32>
    %c81 = arith.constant 81 : index
    %c0_98 = arith.constant 0 : index
    %137 = vector.load %arg5[%c81, %c0_98] : memref<133x256xf32, #tpu.memory_space<vmem>>, vector<4x256xf32>
    tpu.vector_store %arg5[%c81, %c0_98], %136 {strides = array<i32>} : memref<133x256xf32, #tpu.memory_space<vmem>>, vector<4x256xf32>,
    %c0_99 = arith.constant 0 : index
    %c145_100 = arith.constant 145 : index
    %138 = vector.load %arg6[%c0_99, %c145_100] : memref<4x512xf32, #tpu.memory_space<vmem>>, vector<4x256xf32>
    %c8_101 = arith.constant 8 : index
    %c0_102 = arith.constant 0 : index
    %139 = vector.load %arg1[%c8_101, %c0_102] : memref<10x256xf32, #tpu.memory_space<vmem>>, vector<1x256xf32>
    %140 = vector.broadcast %139 : vector<1x256xf32> to vector<4x256xf32>
    %141 = arith.mulf %138, %140 : vector<4x256xf32>
    %142 = arith.addf %134, %141 : vector<4x256xf32>
    %cst_103 = arith.constant 0.000000e+00 : f32
    %143 = vector.broadcast %cst_103 : f32 to vector<4x256xf32>
    %144 = arith.maximumf %141, %143 : vector<4x256xf32>
    %c85 = arith.constant 85 : index
    %c0_104 = arith.constant 0 : index
    %145 = vector.load %arg5[%c85, %c0_104] : memref<133x256xf32, #tpu.memory_space<vmem>>, vector<4x256xf32>
    tpu.vector_store %arg5[%c85, %c0_104], %144 {strides = array<i32>} : memref<133x256xf32, #tpu.memory_space<vmem>>, vector<4x256xf32>,
    %c9_105 = arith.constant 9 : index
    %c0_106 = arith.constant 0 : index
    %146 = vector.load %arg1[%c9_105, %c0_106] : memref<10x256xf32, #tpu.memory_space<vmem>>, vector<1x256xf32>
    %147 = vector.broadcast %146 : vector<1x256xf32> to vector<4x256xf32>
    %148 = arith.mulf %142, %147 : vector<4x256xf32>
    %c49 = arith.constant 49 : index
    %c0_107 = arith.constant 0 : index
    %149 = vector.load %arg5[%c49, %c0_107] : memref<133x256xf32, #tpu.memory_space<vmem>>, vector<4x256xf32>
    tpu.vector_store %arg5[%c49, %c0_107], %148 {strides = array<i32>} : memref<133x256xf32, #tpu.memory_space<vmem>>, vector<4x256xf32>,
    %c1_108 = arith.constant 1 : index
    %c0_109 = arith.constant 0 : index
    %c0_110 = arith.constant 0 : index
    %150 = vector.load %arg3[%c1_108, %c0_109, %c0_110] : memref<3x4x133xf32, #tpu.memory_space<vmem>>, vector<1x4x89xf32>
    %151 = vector.shape_cast %150 : vector<1x4x89xf32> to vector<4x89xf32>
    %c0_111 = arith.constant 0 : index
    %c0_112 = arith.constant 0 : index
    %152 = vector.load %arg5[%c0_111, %c0_112] : memref<133x256xf32, #tpu.memory_space<vmem>>, vector<89x256xf32>
    %cst_113 = arith.constant dense<0.000000e+00> : vector<4x256xf32>
    %153 = tpu.matmul %151, %152, %cst_113 {dimension_numbers = #tpu.dot_dimension_numbers<[1], [0], [0], [1], [0, 0, 1, 1], [], []>} : vector<4x89xf32>, vector<89x256xf32>, vector<4x256xf32> -> vector<4x256xf32>
    %c89 = arith.constant 89 : index
    %c0_114 = arith.constant 0 : index
    %154 = vector.load %arg5[%c89, %c0_114] : memref<133x256xf32, #tpu.memory_space<vmem>>, vector<4x256xf32>
    tpu.vector_store %arg5[%c89, %c0_114], %153 {strides = array<i32>} : memref<133x256xf32, #tpu.memory_space<vmem>>, vector<4x256xf32>,
    %c0_115 = arith.constant 0 : index
    %c128_116 = arith.constant 128 : index
    %155 = vector.load %arg6[%c0_115, %c128_116] : memref<4x512xf32, #tpu.memory_space<vmem>>, vector<4x256xf32>
    tpu.vector_store %arg6[%c0_115, %c128_116], %153 {strides = array<i32>} : memref<4x512xf32, #tpu.memory_space<vmem>>, vector<4x256xf32>,
    %cst_117 = arith.constant 0.000000e+00 : f32
    %156 = vector.broadcast %cst_117 : f32 to vector<4x256xf32>
    %c0_118 = arith.constant 0 : index
    %c111_119 = arith.constant 111 : index
    %157 = vector.load %arg6[%c0_118, %c111_119] : memref<4x512xf32, #tpu.memory_space<vmem>>, vector<4x256xf32>
    %c0_120 = arith.constant 0 : index
    %c0_121 = arith.constant 0 : index
    %158 = vector.load %arg1[%c0_120, %c0_121] : memref<10x256xf32, #tpu.memory_space<vmem>>, vector<1x256xf32>
    %159 = vector.broadcast %158 : vector<1x256xf32> to vector<4x256xf32>
    %160 = arith.mulf %157, %159 : vector<4x256xf32>
    %161 = arith.addf %156, %160 : vector<4x256xf32>
    %cst_122 = arith.constant 0.000000e+00 : f32
    %162 = vector.broadcast %cst_122 : f32 to vector<4x256xf32>
    %163 = arith.maximumf %160, %162 : vector<4x256xf32>
    %c97 = arith.constant 97 : index
    %c0_123 = arith.constant 0 : index
    %164 = vector.load %arg5[%c97, %c0_123] : memref<133x256xf32, #tpu.memory_space<vmem>>, vector<4x256xf32>
    tpu.vector_store %arg5[%c97, %c0_123], %163 {strides = array<i32>} : memref<133x256xf32, #tpu.memory_space<vmem>>, vector<4x256xf32>,
    %c0_124 = arith.constant 0 : index
    %c112_125 = arith.constant 112 : index
    %165 = vector.load %arg6[%c0_124, %c112_125] : memref<4x512xf32, #tpu.memory_space<vmem>>, vector<4x256xf32>
    %166 = arith.addf %161, %165 : vector<4x256xf32>
    %cst_126 = arith.constant 0.000000e+00 : f32
    %167 = vector.broadcast %cst_126 : f32 to vector<4x256xf32>
    %168 = arith.maximumf %165, %167 : vector<4x256xf32>
    %c101 = arith.constant 101 : index
    %c0_127 = arith.constant 0 : index
    %169 = vector.load %arg5[%c101, %c0_127] : memref<133x256xf32, #tpu.memory_space<vmem>>, vector<4x256xf32>
    tpu.vector_store %arg5[%c101, %c0_127], %168 {strides = array<i32>} : memref<133x256xf32, #tpu.memory_space<vmem>>, vector<4x256xf32>,
    %c0_128 = arith.constant 0 : index
    %c113_129 = arith.constant 113 : index
    %170 = vector.load %arg6[%c0_128, %c113_129] : memref<4x512xf32, #tpu.memory_space<vmem>>, vector<4x256xf32>
    %c2_130 = arith.constant 2 : index
    %c0_131 = arith.constant 0 : index
    %171 = vector.load %arg1[%c2_130, %c0_131] : memref<10x256xf32, #tpu.memory_space<vmem>>, vector<1x256xf32>
    %172 = vector.broadcast %171 : vector<1x256xf32> to vector<4x256xf32>
    %173 = arith.mulf %170, %172 : vector<4x256xf32>
    %174 = arith.addf %166, %173 : vector<4x256xf32>
    %cst_132 = arith.constant 0.000000e+00 : f32
    %175 = vector.broadcast %cst_132 : f32 to vector<4x256xf32>
    %176 = arith.maximumf %173, %175 : vector<4x256xf32>
    %c105 = arith.constant 105 : index
    %c0_133 = arith.constant 0 : index
    %177 = vector.load %arg5[%c105, %c0_133] : memref<133x256xf32, #tpu.memory_space<vmem>>, vector<4x256xf32>
    tpu.vector_store %arg5[%c105, %c0_133], %176 {strides = array<i32>} : memref<133x256xf32, #tpu.memory_space<vmem>>, vector<4x256xf32>,
    %c0_134 = arith.constant 0 : index
    %c127_135 = arith.constant 127 : index
    %178 = vector.load %arg6[%c0_134, %c127_135] : memref<4x512xf32, #tpu.memory_space<vmem>>, vector<4x256xf32>
    %c3_136 = arith.constant 3 : index
    %c0_137 = arith.constant 0 : index
    %179 = vector.load %arg1[%c3_136, %c0_137] : memref<10x256xf32, #tpu.memory_space<vmem>>, vector<1x256xf32>
    %180 = vector.broadcast %179 : vector<1x256xf32> to vector<4x256xf32>
    %181 = arith.mulf %178, %180 : vector<4x256xf32>
    %182 = arith.addf %174, %181 : vector<4x256xf32>
    %cst_138 = arith.constant 0.000000e+00 : f32
    %183 = vector.broadcast %cst_138 : f32 to vector<4x256xf32>
    %184 = arith.maximumf %181, %183 : vector<4x256xf32>
    %c109 = arith.constant 109 : index
    %c0_139 = arith.constant 0 : index
    %185 = vector.load %arg5[%c109, %c0_139] : memref<133x256xf32, #tpu.memory_space<vmem>>, vector<4x256xf32>
    tpu.vector_store %arg5[%c109, %c0_139], %184 {strides = array<i32>} : memref<133x256xf32, #tpu.memory_space<vmem>>, vector<4x256xf32>,
    %186 = arith.addf %182, %153 : vector<4x256xf32>
    %cst_140 = arith.constant 0.000000e+00 : f32
    %187 = vector.broadcast %cst_140 : f32 to vector<4x256xf32>
    %188 = arith.maximumf %153, %187 : vector<4x256xf32>
    %c113_141 = arith.constant 113 : index
    %c0_142 = arith.constant 0 : index
    %189 = vector.load %arg5[%c113_141, %c0_142] : memref<133x256xf32, #tpu.memory_space<vmem>>, vector<4x256xf32>
    tpu.vector_store %arg5[%c113_141, %c0_142], %188 {strides = array<i32>} : memref<133x256xf32, #tpu.memory_space<vmem>>, vector<4x256xf32>,
    %c0_143 = arith.constant 0 : index
    %c129_144 = arith.constant 129 : index
    %190 = vector.load %arg6[%c0_143, %c129_144] : memref<4x512xf32, #tpu.memory_space<vmem>>, vector<4x256xf32>
    %c5_145 = arith.constant 5 : index
    %c0_146 = arith.constant 0 : index
    %191 = vector.load %arg1[%c5_145, %c0_146] : memref<10x256xf32, #tpu.memory_space<vmem>>, vector<1x256xf32>
    %192 = vector.broadcast %191 : vector<1x256xf32> to vector<4x256xf32>
    %193 = arith.mulf %190, %192 : vector<4x256xf32>
    %194 = arith.addf %186, %193 : vector<4x256xf32>
    %cst_147 = arith.constant 0.000000e+00 : f32
    %195 = vector.broadcast %cst_147 : f32 to vector<4x256xf32>
    %196 = arith.maximumf %193, %195 : vector<4x256xf32>
    %c117 = arith.constant 117 : index
    %c0_148 = arith.constant 0 : index
    %197 = vector.load %arg5[%c117, %c0_148] : memref<133x256xf32, #tpu.memory_space<vmem>>, vector<4x256xf32>
    tpu.vector_store %arg5[%c117, %c0_148], %196 {strides = array<i32>} : memref<133x256xf32, #tpu.memory_space<vmem>>, vector<4x256xf32>,
    %c0_149 = arith.constant 0 : index
    %c143_150 = arith.constant 143 : index
    %198 = vector.load %arg6[%c0_149, %c143_150] : memref<4x512xf32, #tpu.memory_space<vmem>>, vector<4x256xf32>
    %c6_151 = arith.constant 6 : index
    %c0_152 = arith.constant 0 : index
    %199 = vector.load %arg1[%c6_151, %c0_152] : memref<10x256xf32, #tpu.memory_space<vmem>>, vector<1x256xf32>
    %200 = vector.broadcast %199 : vector<1x256xf32> to vector<4x256xf32>
    %201 = arith.mulf %198, %200 : vector<4x256xf32>
    %202 = arith.addf %194, %201 : vector<4x256xf32>
    %cst_153 = arith.constant 0.000000e+00 : f32
    %203 = vector.broadcast %cst_153 : f32 to vector<4x256xf32>
    %204 = arith.maximumf %201, %203 : vector<4x256xf32>
    %c121 = arith.constant 121 : index
    %c0_154 = arith.constant 0 : index
    %205 = vector.load %arg5[%c121, %c0_154] : memref<133x256xf32, #tpu.memory_space<vmem>>, vector<4x256xf32>
    tpu.vector_store %arg5[%c121, %c0_154], %204 {strides = array<i32>} : memref<133x256xf32, #tpu.memory_space<vmem>>, vector<4x256xf32>,
    %c0_155 = arith.constant 0 : index
    %c144_156 = arith.constant 144 : index
    %206 = vector.load %arg6[%c0_155, %c144_156] : memref<4x512xf32, #tpu.memory_space<vmem>>, vector<4x256xf32>
    %207 = arith.addf %202, %206 : vector<4x256xf32>
    %cst_157 = arith.constant 0.000000e+00 : f32
    %208 = vector.broadcast %cst_157 : f32 to vector<4x256xf32>
    %209 = arith.maximumf %206, %208 : vector<4x256xf32>
    %c125 = arith.constant 125 : index
    %c0_158 = arith.constant 0 : index
    %210 = vector.load %arg5[%c125, %c0_158] : memref<133x256xf32, #tpu.memory_space<vmem>>, vector<4x256xf32>
    tpu.vector_store %arg5[%c125, %c0_158], %209 {strides = array<i32>} : memref<133x256xf32, #tpu.memory_space<vmem>>, vector<4x256xf32>,
    %c0_159 = arith.constant 0 : index
    %c145_160 = arith.constant 145 : index
    %211 = vector.load %arg6[%c0_159, %c145_160] : memref<4x512xf32, #tpu.memory_space<vmem>>, vector<4x256xf32>
    %c8_161 = arith.constant 8 : index
    %c0_162 = arith.constant 0 : index
    %212 = vector.load %arg1[%c8_161, %c0_162] : memref<10x256xf32, #tpu.memory_space<vmem>>, vector<1x256xf32>
    %213 = vector.broadcast %212 : vector<1x256xf32> to vector<4x256xf32>
    %214 = arith.mulf %211, %213 : vector<4x256xf32>
    %215 = arith.addf %207, %214 : vector<4x256xf32>
    %cst_163 = arith.constant 0.000000e+00 : f32
    %216 = vector.broadcast %cst_163 : f32 to vector<4x256xf32>
    %217 = arith.maximumf %214, %216 : vector<4x256xf32>
    %c129_164 = arith.constant 129 : index
    %c0_165 = arith.constant 0 : index
    %218 = vector.load %arg5[%c129_164, %c0_165] : memref<133x256xf32, #tpu.memory_space<vmem>>, vector<4x256xf32>
    tpu.vector_store %arg5[%c129_164, %c0_165], %217 {strides = array<i32>} : memref<133x256xf32, #tpu.memory_space<vmem>>, vector<4x256xf32>,
    %c9_166 = arith.constant 9 : index
    %c0_167 = arith.constant 0 : index
    %219 = vector.load %arg1[%c9_166, %c0_167] : memref<10x256xf32, #tpu.memory_space<vmem>>, vector<1x256xf32>
    %220 = vector.broadcast %219 : vector<1x256xf32> to vector<4x256xf32>
    %221 = arith.mulf %215, %220 : vector<4x256xf32>
    %c93 = arith.constant 93 : index
    %c0_168 = arith.constant 0 : index
    %222 = vector.load %arg5[%c93, %c0_168] : memref<133x256xf32, #tpu.memory_space<vmem>>, vector<4x256xf32>
    tpu.vector_store %arg5[%c93, %c0_168], %221 {strides = array<i32>} : memref<133x256xf32, #tpu.memory_space<vmem>>, vector<4x256xf32>,
    %c2_169 = arith.constant 2 : index
    %c0_170 = arith.constant 0 : index
    %c0_171 = arith.constant 0 : index
    %223 = vector.load %arg3[%c2_169, %c0_170, %c0_171] : memref<3x4x133xf32, #tpu.memory_space<vmem>>, vector<1x4x133xf32>
    %224 = vector.shape_cast %223 : vector<1x4x133xf32> to vector<4x133xf32>
    %c0_172 = arith.constant 0 : index
    %c0_173 = arith.constant 0 : index
    %225 = vector.load %arg5[%c0_172, %c0_173] : memref<133x256xf32, #tpu.memory_space<vmem>>, vector<133x256xf32>
    %cst_174 = arith.constant dense<0.000000e+00> : vector<4x256xf32>
    %226 = tpu.matmul %224, %225, %cst_174 {dimension_numbers = #tpu.dot_dimension_numbers<[1], [0], [0], [1], [0, 0, 1, 1], [], []>} : vector<4x133xf32>, vector<133x256xf32>, vector<4x256xf32> -> vector<4x256xf32>
    %c0_175 = arith.constant 0 : index
    %c0_176 = arith.constant 0 : index
    %c0_177 = arith.constant 0 : index
    %227 = vector.load %arg4[%c0_175, %c0_176, %c0_177] : memref<1x4x256xf32, #tpu.memory_space<vmem>>, vector<1x4x256xf32>
    %228 = vector.shape_cast %227 : vector<1x4x256xf32> to vector<4x256xf32>
    %229 = vector.shape_cast %226 : vector<4x256xf32> to vector<1x4x256xf32>
    tpu.vector_store %arg4[%c0_175, %c0_176, %c0_177], %229 {strides = array<i32>} : memref<1x4x256xf32, #tpu.memory_space<vmem>>, vector<1x4x256xf32>,
    return
  }
  func.func @transform_0(%arg0: i32) -> (i32, i32) {
    %c0_i32 = arith.constant 0 : i32
    %c0_i32_0 = arith.constant 0 : i32
    %c0_i32_1 = arith.constant 0 : i32
    return %c0_i32, %c0_i32_0 : i32, i32
  }
  func.func @transform_1(%arg0: i32) -> (i32, i32, i32) {
    %c0_i32 = arith.constant 0 : i32
    %c0_i32_0 = arith.constant 0 : i32
    %c0_i32_1 = arith.constant 0 : i32
    return %arg0, %c0_i32, %c0_i32_0 : i32, i32, i32
  }
  func.func @transform_2(%arg0: i32) -> (i32, i32, i32) {
    %c0_i32 = arith.constant 0 : i32
    %c0_i32_0 = arith.constant 0 : i32
    %c0_i32_1 = arith.constant 0 : i32
    %c0_i32_2 = arith.constant 0 : i32
    return %c0_i32, %c0_i32_0, %c0_i32_1 : i32, i32, i32
  }
  func.func @transform_3(%arg0: i32) -> (i32, i32, i32) {
    %c0_i32 = arith.constant 0 : i32
    %c0_i32_0 = arith.constant 0 : i32
    %c0_i32_1 = arith.constant 0 : i32
    return %arg0, %c0_i32, %c0_i32_0 : i32, i32, i32
  }
}

</mosaic_0001>

<bundles_post_ra>
// kernel: normal_cell_forward.1
= control target key start
LH: loop header
LB: loop body
LE: loop exit
PB: predicated region body
PF: predicated region fallthrough
CT: control target
= control target key end

     0   :  { %s2149_s12 = smov 0   ;;  %s2767_s0 = inlined_call_operand.vmem [shape: f32[10,256], index: 0, kind: input, shape index: {}]   ;;  %s2768_s1 = inlined_call_operand.vmem [shape: f32[2,4,256], index: 1, kind: input, shape index: {}]   ;;  %s2769_s2 = inlined_call_operand.vmem [shape: f32[3,4,133], index: 2, kind: input, shape index: {}]   ;;  %s2770_s3 = inlined_call_operand.vmem [shape: f32[2,4,256], index: 3, kind: output, shape index: {}]  }
   0x1 LB: > { %s1966_s13 = sadd.s32 4294967295, %s2111_s12   ;;  %p1970_p0 = scmp.ge.s32.totalorder %s2111_s12, 1  ;;  %s2111_s12 = sphi %s2149_s12, %s13_s12  }
   0x2   : > { %p137_p1 = scmp.lt.s32.totalorder %s2111_s12, 3 }
   0x4   : > { %p138_p2 = pnand %p1970_p0, %p137_p1 }
   0x5   : > { %v173_v0 = vlaneseq (!%p138_p2)  ;;  %v2113_v1 = vmov (!%p138_p2), 0.0   ;;  %v1975_v3 = vld [vmem:[%s2767_s0 + $0x2] ss:$8 sm:$0x3] (!%p138_p2)  ;;  %p161_p3 = scmp.lt.s32.totalorder (!%p138_p2), %s1966_s13, 1  ;;  %s2114_s30 = smov (!%p138_p2), 113  }
   0x6   : > { %141 = sbr.rel (%p138_p2) target bundleno = 1665 (0x681), region = 32  ;;  %171 = vst [vmem:[#allocation3] sm:$0xf] (!%p138_p2), %v2113_v1  ;;  %172 = vst [vmem:[#allocation3 + $0xc] sm:$0xf] (!%p138_p2), %v2113_v1  ;;  %747 = vmatprep.mubr.f32.mxu1 (!%p138_p2), %v2113_v1  ;;  %s2115_s4 = smov (!%p138_p2), 1  }
   0x7   : > { %v194_v2 = vshrl.u32 (!%p138_p2), %v173_v0, 7  ;;  %v1976_v4 = vld [vmem:[%s2767_s0 + $0x3] ss:$8 sm:$0x3] (!%p138_p2)  ;;  %s2116_s5 = smov (!%p138_p2), 127   ;;  %s2117_s6 = smov (!%p138_p2), 15  }
   0x8   : > { %v1977_v5 = vld [vmem:[%s2767_s0 + $0x5] ss:$8 sm:$0x3] (!%p138_p2)  ;;  %v1978_v8 = vld [vmem:[%s2767_s0 + $0x6] ss:$8 sm:$0x3] (!%p138_p2) }
   0x9   : > { %v2170_v6 = vsub.s32 (!%p138_p2), 0, %v194_v2  ;;  %v2172_v7 = vsub.s32 (!%p138_p2), 1, %v194_v2  ;;  %v1979_v17 = vld [vmem:[%s2767_s0 + $0x10] ss:$8 sm:$0x3] (!%p138_p2)  ;;  %s2118_s7 = smov (!%p138_p2), 17  }
   0xa   : > { %v191_v19 = vld [vmem:[%s2767_s0] ss:$8 sm:$0x3] (!%p138_p2)  ;;  %s2119_s8 = smov (!%p138_p2), 111   ;;  %vm292_vm0 = vcmask (!%p138_p2), 924672   ;;  %vm246_vm1 = vcmask (!%p138_p2), 1039360  }
   0xb   : > { %v283_v9 = vrot.slane (!%p138_p2), %v1975_v3, %v2170_v6  ;;  %v287_v10 = vrot.slane (!%p138_p2), %v1975_v3, %v2172_v7  ;;  %v342_v11 = vrot.slane (!%p138_p2), %v1976_v4, %v2170_v6  ;;  %v346_v12 = vrot.slane (!%p138_p2), %v1976_v4, %v2172_v7  ;;  %s2120_s9 = smov (!%p138_p2), 126   ;;  %s2121_s10 = smov (!%p138_p2), 112   ;;  %v1980_v55 = vld [vmem:[%s2767_s0 + $0x11] ss:$8 sm:$0x3] (!%p138_p2) }
   0xc   : > { %v419_v13 = vrot.slane (!%p138_p2), %v1977_v5, %v2170_v6  ;;  %v423_v14 = vrot.slane (!%p138_p2), %v1977_v5, %v2172_v7  ;;  %v477_v15 = vrot.slane (!%p138_p2), %v1978_v8, %v2170_v6  ;;  %v481_v16 = vrot.slane (!%p138_p2), %v1978_v8, %v2172_v7  ;;  %s2122_s11 = smov (!%p138_p2), 110   ;;  %s2123_s14 = smov (!%p138_p2), 95  }
   0xd   : > { %s2785_s13 = smov (!%p161_p3, %s1966_s13), 1  ;;  %v288_v18 = vcombine.low %v283_v9, %v287_v10  ;;  %v347_v21 = vcombine.low %v342_v11, %v346_v12  ;;  %v571_v22 = vrot.slane %v1979_v17, %v2170_v6  ;;  %v575_v23 = vrot.slane %v1979_v17, %v2172_v7  ;;  %v412_v43 = vld [vmem:[#allocation3 + $0xc] sm:$0xf]  ;;  %s2124_s17 = smov 96  }
   0xe   : > { %s2006_s26 = sshll.u32 %s2785_s13, 3  ;;  %v424_v20 = vcombine.low %v419_v13, %v423_v14  ;;  %v482_v25 = vcombine.low %v477_v15, %v481_v16  ;;  %v196_v26 = vrot.slane %v191_v19, %v2170_v6  ;;  %v200_v27 = vrot.slane %v191_v19, %v2172_v7  ;;  %v470_v57 = vld [vmem:[#allocation3 + $0xc] sm:$0xf]  ;;  %s2125_s18 = smov 94  }
   0xf   : > { %s165_s29 = scalar_lea.vmem %s2768_s1, %s2006_s26  ;;  %289 = vrot.lane.b32.xlu0 %v288_v18, %s2114_s30  ;;  %v576_v28 = vcombine.low %v571_v22, %v575_v23  ;;  %vm385_vm2 = vcmask 7168   ;;  %vm327_vm3 = vcmask 121856   ;;  %vm227_vm4 = vcmask 138240   ;;  %v2273_v3 = vld [vmem:[#allocation3 + $0xc] sm:$0xf]  ;;  %s2126_s19 = smov 16  }
  0x10   : > { %v2202_v24 = vld [vmem:[%s165_s29] sm:$0xff]  ;;  %425 = vrot.lane.b32.xlu1 %v424_v20, %s2115_s4  ;;  %v201_v29 = vcombine.low %v196_v26, %v200_v27  ;;  %v625_v59 = vrot.slane %v1980_v55, %v2170_v6  ;;  %v629_v60 = vrot.slane %v1980_v55, %v2172_v7  ;;  %v564_v9 = vld [vmem:[#allocation3 + $0xc] sm:$0xf]  ;;  %vm205_vm5 = vcmask 908288  }
  0x11   : > { %188 = vst [vmem:[#allocation3 + $0x4] sm:$0xff] %v2202_v24  ;;  %v2269_v2 = vmax.f32 %v2202_v24, 0.0  ;;  %vm244_vm6 = vcmask 1043456   ;;  %vm307_vm7 = vcmask 1031168   ;;  %vm365_vm8 = vcmask 916480  }
  0x12   : > { %v630_v4 = vcombine.low %v625_v59, %v629_v60  ;;  %vm440_vm9 = vcmask 900096   ;;  %vm498_vm10 = vcmask 785408   ;;  %vm534_vm11 = vcmask 777216  }
  0x13   : > { %348 = vrot.lane.b32.xlu0 %v347_v21, %s2116_s5  ;;  %v545_v14 = vcombine.high %v2269_v2, %v2269_v2  ;;  %vm2772_vm12 = vcmask 769024   ;;  %vm175_vm13 = vcmp.lt.s32.totalorder %v173_v0, 256  ;;  %vm2771_vm14 = vcmask 130048  }
  0x14   : > { %483 = vrot.lane.b32.xlu1 %v482_v25, %s2117_s6  ;;  %vm2773_vm15 = vcmask 1044480  }
  0x15   : > { %v547_v18 = vrot.slane %v545_v14, 3 }
  0x17   : > { %577 = vrot.lane.b32.xlu0 %v576_v28, %s2118_s7 }
  0x18   : > { %202 = vrot.lane.b32.xlu1 %v201_v29, %s2119_s8  ;;  %v2212_v30 = vld [vmem:[#allocation3] sm:$0xff]  ;;  %v2214_v31 = vld [vmem:[#allocation3 + $0x8] sm:$0xf] }
  0x19   : > { %v276_v33 = vld [vmem:[#allocation3 + $0x8] sm:$0xf]  ;;  %v252_v61 = vmax.f32 %v2212_v30, 0.0  ;;  %v253_v11 = vmax.f32 %v2214_v31, 0.0 }
  0x1a   : > { %v335_v40 = vld [vmem:[#allocation3 + $0x8] sm:$0xf] }
  0x1b   : > { %238 = vrot.lane.b32.xlu0 %v2212_v30, %s2116_s5  ;;  %v256_v5 = vcombine.high %v252_v61, %v252_v61  ;;  %v190_v13 = vld [vmem:[#allocation3 + $0x8] sm:$0xf]  ;;  %v259_v17 = vrot.slane %v253_v11, 3  ;;  %v257_v20 = vrot.slane %v252_v61, 3 }
  0x1c   : > { %240 = vrot.lane.b32.xlu1 %v2214_v31, %s2116_s5 }
  0x1d   : > { %v258_v12 = vrot.slane %v256_v5, 3 }
  0x1f   : > { %394 = vrot.lane.b32.xlu0 %v2202_v24, %s2119_s8 }
  0x81   : > { %v290_v32 = vpop.permute.xlu0 %289 }
  0x82   : > { %v291_v34 = vrot.slane %v290_v32, 4  ;;  %v426_v35 = vpop.permute.xlu1 %425 }
  0x83   : > { %v427_v45 = vrot.slane %v426_v35, 4 }
  0x84   : > { %v293_v36 = vsel %vm292_vm0, %v291_v34, %v290_v32  ;;  %v2223_v37 = vmul.f32 %v291_v34, %v276_v33 }
  0x85   : > { %v349_v38 = vpop.permute.xlu0 %348  ;;  %v2226_v39 = vmul.f32 %v293_v36, %v2212_v30  ;;  %v2240_v49 = vmul.f32 %v427_v45, %v412_v43  ;;  %v428_v51 = vsel %vm385_vm2, %v427_v45, %v426_v35 }
  0x86   : > { %v350_v41 = vrot.slane %v349_v38, 4  ;;  %302 = vrot.lane.b32.xlu1 %v2223_v37, %s2120_s9  ;;  %v484_v42 = vpop.permute.xlu1 %483  ;;  %v431_v54 = vmul.f32 %v428_v51, %v2202_v24  ;;  %v314_v19 = vmax.f32 %v2223_v37, 0.0 }
  0x87   : > { %300 = vrot.lane.b32.xlu0 %v2226_v39, %s2120_s9  ;;  %v485_v48 = vrot.slane %v484_v42, 4  ;;  %v448_v31 = vmax.f32 %v2240_v49, 0.0  ;;  %v313_v34 = vmax.f32 %v2226_v39, 0.0 }
  0x88   : > { %v351_v44 = vsel %vm246_vm1, %v350_v41, %v349_v38  ;;  %v2233_v46 = vmul.f32 %v350_v41, %v335_v40  ;;  %v320_v23 = vrot.slane %v314_v19, 7  ;;  %v447_v37 = vmax.f32 %v431_v54, 0.0 }
  0x89   : > { %v2236_v47 = vmul.f32 %v351_v44, %v2212_v30  ;;  %v578_v50 = vpop.permute.xlu0 %577  ;;  %v486_v52 = vsel %vm327_vm3, %v485_v48, %v484_v42  ;;  %v490_v62 = vmul.f32 %v485_v48, %v470_v57  ;;  %v454_v35 = vrot.slane %v448_v31, 3 }
  0x8a   : > { %360 = vrot.lane.b32.xlu1 %v2233_v46, %s2121_s10  ;;  %v579_v53 = vrot.slane %v578_v50, 4  ;;  %v2255_v56 = vmul.f32 %v486_v52, %v2202_v24  ;;  %v203_v8 = vpop.permute.xlu1 %202  ;;  %v372_v25 = vmax.f32 %v2233_v46, 0.0  ;;  %v318_v36 = vrot.slane %v313_v34, 7 }
  0x8b   : > { %358 = vrot.lane.b32.xlu0 %v2236_v47, %s2121_s10  ;;  %v204_v10 = vrot.slane %v203_v8, 4  ;;  %v506_v28 = vmax.f32 %v490_v62, 0.0  ;;  %v371_v38 = vmax.f32 %v2236_v47, 0.0  ;;  %v452_v41 = vrot.slane %v447_v37, 3 }
  0x8c   : > { %v580_v58 = vsel %vm227_vm4, %v579_v53, %v578_v50  ;;  %v2281_v15 = vmul.f32 %v579_v53, %v564_v9  ;;  %v378_v29 = vrot.slane %v372_v25, 3  ;;  %v317_v42 = vcombine.high %v313_v34, %v313_v34 }
  0x8d   : > { %v2265_v63 = vmul.f32 %v580_v58, %v2202_v24  ;;  %v2285_v16 = vmul.f32 %v204_v10, %v190_v13  ;;  %v206_v22 = vsel %vm205_vm5, %v204_v10, %v203_v8  ;;  %v512_v33 = vrot.slane %v506_v28, 7 }
  0x8e   : > { %437 = vrot.lane.b32.xlu1 %v2240_v49, %s2122_s11  ;;  %v209_v27 = vmul.f32 %v2212_v30, %v206_v22  ;;  %v2307_v43 = vmax.f32 %v2255_v56, 0.0  ;;  %v376_v39 = vrot.slane %v371_v38, 3  ;;  %v319_v45 = vrot.slane %v317_v42, 7  ;;  %v241_v55 = vpop.permute.xlu1 %240 }
  0x8f   : > { %529 = vrot.lane.b32.xlu0 %v2202_v24, %s2123_s14  ;;  %v214_v21 = vmax.f32 %v2285_v16, 0.0  ;;  %v375_v46 = vcombine.high %v371_v38, %v371_v38  ;;  %v406_v48 = vrot.slane %v545_v14, 7  ;;  %v405_v49 = vrot.slane %v2269_v2, 7 }
  0x90   : > { %v213_v32 = vmax.f32 %v209_v27, 0.0  ;;  %v509_v47 = vcombine.high %v2307_v43, %v2307_v43  ;;  %v451_v51 = vcombine.high %v447_v37, %v447_v37  ;;  %v251_v13 = vadd.f32 %v241_v55, %v2285_v16 }
  0x91   : > { %v220_v26 = vrot.slane %v214_v21, 7  ;;  %410 = vst [vmem:[#allocation2 + $0x38] sm:$0x1e] %v406_v48  ;;  %409 = vst [vmem:[#allocation2 + $0x30] sm:$0x1e] %v405_v49  ;;  %v377_v50 = vrot.slane %v375_v46, 3 }
  0x92   : > { %435 = vrot.lane.b32.xlu1 %v431_v54, %s2122_s11  ;;  %v218_v30 = vrot.slane %v213_v32, 7  ;;  %v217_v40 = vcombine.high %v213_v32, %v213_v32  ;;  %v511_v52 = vrot.slane %v509_v47, 7  ;;  %v453_v53 = vrot.slane %v451_v51, 3  ;;  %v239_v54 = vpop.permute.xlu0 %238 }
  0x93   : > { %493 = vrot.lane.b32.xlu0 %v2255_v56, %s2124_s17  ;;  %v243_v56 = vrot.slane %v241_v55, 4  ;;  %v242_v57 = vrot.slane %v239_v54, 4  ;;  %v181_v55 = vcombine.high %v2202_v24, %v2202_v24 }
  0x94   : > { %v219_v44 = vrot.slane %v217_v40, 7 }
  0x95   : > { %v245_v59 = vsel %vm244_vm6, %v242_v57, %v243_v56 }
  0x96   : > { %495 = vrot.lane.b32.xlu1 %v490_v62, %s2124_s17  ;;  %v395_v58 = vpop.permute.xlu0 %394  ;;  %v247_v5 = vsel %vm246_vm1, %v239_v54, %v245_v59  ;;  %v183_v59 = vrot.slane %v181_v55, 7 }
  0x97   : > { %587 = vrot.lane.b32.xlu0 %v2265_v63, %s2125_s18  ;;  %v250_v14 = vadd.f32 %v247_v5, %v209_v27  ;;  %v396_v21 = vrot.slane %v395_v58, 4 }
  0x98   : > { %187 = vst [vmem:[#allocation2 + $0x8] sm:$0x1e] %v183_v59 }
  0x99   : > { %v397_v31 = vsel %vm205_vm5, %v396_v21, %v395_v58 }
  0x9a   : > { %531 = vrot.lane.b32.xlu1 %v2273_v3, %s2123_s14 }
  0x9b   : > { %631 = vrot.lane.b32.xlu0 %v630_v4, %s2119_s8 }
  0x9e   : > { %589 = vrot.lane.b32.xlu1 %v2281_v15, %s2125_s18 }
  0x9f   : > { %262 = vrot.lane.b32.xlu0 %v258_v12, %s2126_s19 }
  0xa2   : > { %264 = vrot.lane.b32.xlu1 %v259_v17, %s2126_s19 }
  0xa3   : > { %551 = vrot.lane.b32.xlu0 %v547_v18, %s2121_s10 }
  0xa6   : > { %260 = vrot.lane.b32.xlu1 %v257_v20, %s2126_s19 }
  0xa7   : > { %325 = vrot.lane.b32.xlu0 %v320_v23, %s2117_s6 }
  0xaa   : > { %225 = vrot.lane.b32.xlu1 %v220_v26, %s2118_s7 }
  0xab   : > { %383 = vrot.lane.b32.xlu0 %v378_v29, %s2115_s4 }
  0xae   : > { %517 = vrot.lane.b32.xlu1 %v512_v33, %s2114_s30 }
  0xaf   : > { %459 = vrot.lane.b32.xlu0 %v454_v35, %s2116_s5 }
  0xb2   : > { %321 = vrot.lane.b32.xlu1 %v318_v36, %s2117_s6 }
  0xb3   : > { %221 = vrot.lane.b32.xlu0 %v218_v30, %s2118_s7 }
  0xb6   : > { %455 = vrot.lane.b32.xlu1 %v452_v41, %s2116_s5 }
  0xb7   : > { %379 = vrot.lane.b32.xlu0 %v376_v39, %s2115_s4 }
  0xba   : > { %323 = vrot.lane.b32.xlu1 %v319_v45, %s2117_s6 }
  0xbb   : > { %223 = vrot.lane.b32.xlu0 %v219_v44, %s2118_s7 }
  0xbe   : > { %381 = vrot.lane.b32.xlu1 %v377_v50, %s2115_s4 }
  0xbf   : > { %515 = vrot.lane.b32.xlu0 %v511_v52, %s2114_s30 }
  0xc2   : > { %457 = vrot.lane.b32.xlu1 %v453_v53, %s2116_s5 }
  0xf8   : > { %v303_v60 = vpop.permute.xlu1 %302 }
  0xf9   : > { %v305_v61 = vrot.slane %v303_v60, 4  ;;  %v301_v62 = vpop.permute.xlu0 %300  ;;  %v312_v25 = vadd.f32 %v303_v60, %v251_v13  ;;  %v182_v60 = vrot.slane %v2202_v24, 7 }
  0xfa   : > { %v304_v4 = vrot.slane %v301_v62, 4 }
  0xfb   : > { %186 = vst [vmem:[#allocation2] sm:$0x1e] %v182_v60 }
  0xfc   : > { %v306_v8 = vsel %vm244_vm6, %v304_v4, %v305_v61  ;;  %v361_v9 = vpop.permute.xlu1 %360 }
  0xfd   : > { %v308_v10 = vsel %vm307_vm7, %v301_v62, %v306_v8  ;;  %v363_v11 = vrot.slane %v361_v9, 4  ;;  %v359_v12 = vpop.permute.xlu0 %358  ;;  %v370_v28 = vadd.f32 %v361_v9, %v312_v25  ;;  %v2127_v8 = vmov 1.0  }
  0xfe   : > { %v362_v17 = vrot.slane %v359_v12, 4  ;;  %v311_v18 = vadd.f32 %v308_v10, %v250_v14  ;;  %177 = vst.msk [vmem:[#allocation2] ss:$8 sm:$0x3] %vm175_vm13, %v2127_v8  ;;  %v599_v9 = vmax.f32 %v2265_v63, 0.0  ;;  %vm2128_vm13 = vmmov 1  }
  0xff   : > { %v401_v36 = vadd.f32 %v396_v21, %v370_v28 }
 0x100   : > { %v364_v19 = vsel %vm244_vm6, %v362_v17, %v363_v11  ;;  %v438_v20 = vpop.permute.xlu1 %437 }
 0x101   : > { %v366_v22 = vsel %vm365_vm8, %v359_v12, %v364_v19  ;;  %v530_v23 = vpop.permute.xlu0 %529  ;;  %v542_v12 = vmax.f32 %v2273_v3, 0.0  ;;  %v603_v19 = vcombine.high %v599_v9, %v599_v9  ;;  %v600_v3 = vmax.f32 %v2281_v15, 0.0 }
 0x102   : > { %v369_v26 = vadd.f32 %v366_v22, %v311_v18  ;;  %v533_v34 = vrot.slane %v530_v23, 4 }
 0x103   : > { %v606_v28 = vrot.slane %v600_v3, 7 }
 0x104   : > { %v436_v29 = vpop.permute.xlu1 %435  ;;  %v400_v27 = vadd.f32 %v397_v31, %v369_v26  ;;  %v535_v45 = vsel %vm534_vm11, %v533_v34, %v530_v23  ;;  %v605_v23 = vrot.slane %v603_v19, 7 }
 0x105   : > { %v439_v32 = vrot.slane %v436_v29, 4  ;;  %v494_v16 = vpop.permute.xlu0 %493 }
 0x106   : > { %v497_v33 = vrot.slane %v494_v16, 4 }
 0x107   : > { %v441_v35 = vsel %vm440_vm9, %v439_v32, %v436_v29  ;;  %v442_v30 = vsel %vm440_vm9, %v439_v32, %v438_v20  ;;  %v548_v20 = vrot.slane %v542_v12, 3  ;;  %v510_v29 = vrot.slane %v2307_v43, 7  ;;  %v1984_v43 = vld [vmem:[%s2767_s0 + $0x2] ss:$8 sm:$0x3] }
 0x108   : > { %v445_v37 = vadd.f32 %v441_v35, %v400_v27  ;;  %v499_v38 = vsel %vm498_vm10, %v497_v33, %v494_v16  ;;  %v496_v40 = vpop.permute.xlu1 %495  ;;  %v446_v39 = vadd.f32 %v442_v30, %v401_v36  ;;  %v546_v32 = vrot.slane %v2269_v2, 3  ;;  %v1985_v2 = vld [vmem:[%s2767_s0 + $0x3] ss:$8 sm:$0x3] }
 0x109   : > { %v588_v41 = vpop.permute.xlu0 %587  ;;  %v500_v46 = vsel %vm498_vm10, %v497_v33, %v496_v40  ;;  %v604_v27 = vrot.slane %v599_v9, 7  ;;  %v855_v36 = vrot.slane %v1984_v43, %v2170_v6  ;;  %v916_v40 = vrot.slane %v1985_v2, %v2172_v7 }
 0x10a   : > { %v503_v42 = vadd.f32 %v499_v38, %v445_v37  ;;  %v591_v44 = vrot.slane %v588_v41, 4  ;;  %v504_v52 = vadd.f32 %v500_v46, %v446_v39  ;;  %v859_v37 = vrot.slane %v1984_v43, %v2172_v7 }
 0x10b   : > { %v912_v38 = vrot.slane %v1985_v2, %v2170_v6 }
 0x10c   : > { %v539_v47 = vadd.f32 %v535_v45, %v503_v42  ;;  %v593_v48 = vsel %vm2772_vm12, %v591_v44, %v588_v41  ;;  %v532_v49 = vpop.permute.xlu1 %531  ;;  %v1986_v41 = vld [vmem:[%s2767_s0 + $0x5] ss:$8 sm:$0x3]  ;;  %v1987_v42 = vld [vmem:[%s2767_s0 + $0x6] ss:$8 sm:$0x3] }
 0x10d   : > { %v536_v50 = vsel %vm534_vm11, %v533_v34, %v532_v49  ;;  %v632_v51 = vpop.permute.xlu0 %631  ;;  %v987_v46 = vrot.slane %v1986_v41, %v2170_v6  ;;  %v769_v49 = vld [vmem:[%s2767_s0] ss:$8 sm:$0x3]  ;;  %v1041_v55 = vrot.slane %v1987_v42, %v2170_v6 }
 0x10e   : > { %v597_v53 = vadd.f32 %v593_v48, %v539_v47  ;;  %v633_v54 = vrot.slane %v632_v51, 4  ;;  %v540_v56 = vadd.f32 %v536_v50, %v504_v52  ;;  %v991_v47 = vrot.slane %v1986_v41, %v2172_v7  ;;  %v1988_v48 = vld [vmem:[%s2767_s0 + $0x10] ss:$8 sm:$0x3] }
 0x10f   : > { %v860_v52 = vcombine.low %v855_v36, %v859_v37  ;;  %v1136_v59 = vrot.slane %v1988_v48, %v2172_v7  ;;  %v774_v60 = vrot.slane %v769_v49, %v2170_v6 }
 0x110   : > { %v634_v57 = vsel %vm205_vm5, %v633_v54, %v632_v51  ;;  %v590_v58 = vpop.permute.xlu1 %589 }
 0x111   : > { %v637_v61 = vmul.f32 %v634_v57, %v597_v53  ;;  %v594_v62 = vsel %vm2772_vm12, %v591_v44, %v590_v58  ;;  %v263_v4 = vpop.permute.xlu0 %262  ;;  %v917_v53 = vcombine.low %v912_v38, %v916_v40  ;;  %v1132_v57 = vrot.slane %v1988_v48, %v2170_v6  ;;  %v981_v48 = vld [vmem:[#allocation3 + $0xc] sm:$0xf] }
 0x112   : > { %v598_v5 = vadd.f32 %v594_v62, %v540_v56  ;;  %v1045_v56 = vrot.slane %v1987_v42, %v2172_v7  ;;  %vm672_vm12 = vcmask 367616  }
 0x113   : > { %v642_v10 = vrot.slane %v637_v61, 3  ;;  %v641_v11 = vcombine.high %v637_v61, %v637_v61  ;;  %v778_v61 = vrot.slane %v769_v49, %v2172_v7 }
 0x114   : > { %v265_v13 = vpop.permute.xlu1 %264  ;;  %v638_v24 = vmul.f32 %v633_v54, %v598_v5  ;;  %v992_v54 = vcombine.low %v987_v46, %v991_v47  ;;  %v1046_v8 = vcombine.low %v1041_v55, %v1045_v56 }
 0x115   : > { %v268_v14 = vsel %vm2771_vm14, %v263_v4, %v265_v13  ;;  %v2343_v17 = vpop.permute.xlu0 %551  ;;  %645 = vrot.lane.b32.xlu0 %v642_v10, %s2118_s7  ;;  %v643_v18 = vrot.slane %v641_v11, 3  ;;  %v1137_v11 = vcombine.low %v1132_v57, %v1136_v59  ;;  %v779_v12 = vcombine.low %v774_v60, %v778_v61 }
 0x116   : > { %272 = vst [vmem:[#allocation2 + $0x28] ss:$-12 sps:$4 sm:$0xe1] %v268_v14   ;;  %v644_v0 = vrot.slane %v638_v24, 3 }
 0x118   : > { %v261_v21 = vpop.permute.xlu1 %260  ;;  %649 = vrot.lane.b32.xlu1 %v644_v0, %s2118_s7 }
 0x119   : > { %v267_v63 = vsel %vm2771_vm14, %v261_v21, %v263_v4  ;;  %v326_v22 = vpop.permute.xlu0 %325  ;;  %647 = vrot.lane.b32.xlu0 %v643_v18, %s2118_s7  ;;  %vm2017_vm14 = vmpackc.low %vm2773_vm15, %vm2128_vm13  ;;  %vm1244_vm15 = vcmask 728064  }
 0x11a   : > { %271 = vst [vmem:[#allocation2 + $0x20] ss:$-12 sps:$4 sm:$0xe1] %v267_v63  }
 0x11c   : > { %553 = vrot.lane.b32.xlu1 %v548_v20, %s2121_s10  ;;  %v226_v25 = vpop.permute.xlu1 %225 }
 0x11d   : > { %v384_v26 = vpop.permute.xlu0 %383  ;;  %609 = vrot.lane.b32.xlu0 %v605_v23, %s2119_s8 }
 0x120   : > { %611 = vrot.lane.b32.xlu1 %v606_v28, %s2119_s8  ;;  %v518_v31 = vpop.permute.xlu1 %517 }
 0x121   : > { %v460_v16 = vpop.permute.xlu0 %459  ;;  %513 = vrot.lane.b32.xlu0 %v510_v29, %s2114_s30 }
 0x124   : > { %549 = vrot.lane.b32.xlu1 %v546_v32, %s2121_s10  ;;  %v322_v15 = vpop.permute.xlu1 %321 }
 0x125   : > { %v222_v33 = vpop.permute.xlu0 %221  ;;  %607 = vrot.lane.b32.xlu0 %v604_v27, %s2119_s8 }
 0x128   : > { %v456_v34 = vpop.permute.xlu1 %455  ;;  %861 = vrot.lane.b32.xlu1 %v860_v52, %s2114_s30 }
 0x129   : > { %v380_v35 = vpop.permute.xlu0 %379  ;;  %918 = vrot.lane.b32.xlu0 %v917_v53, %s2116_s5 }
 0x12c   : > { %v324_v30 = vpop.permute.xlu1 %323  ;;  %993 = vrot.lane.b32.xlu1 %v992_v54, %s2115_s4 }
 0x12d   : > { %v328_v39 = vsel %vm327_vm3, %v322_v15, %v324_v30  ;;  %v329_v44 = vsel %vm327_vm3, %v324_v30, %v326_v22  ;;  %v224_v45 = vpop.permute.xlu0 %223  ;;  %1047 = vrot.lane.b32.xlu0 %v1046_v8, %s2117_s6 }
 0x12e   : > { %332 = vst [vmem:[#allocation2 + $0x20] sm:$0x1e] %v328_v39  ;;  %333 = vst [vmem:[#allocation2 + $0x28] sm:$0x1e] %v329_v44  ;;  %v228_v50 = vsel %vm227_vm4, %v222_v33, %v224_v45  ;;  %v229_v51 = vsel %vm227_vm4, %v224_v45, %v226_v25  ;;  %v659_v45 = vld [vmem:[%s2769_s2] sm:$0xf] }
 0x12f   : > { %232 = vst [vmem:[#allocation2 + $0x10] sm:$0x1e] %v228_v50  ;;  %233 = vst [vmem:[#allocation2 + $0x18] sm:$0x1e] %v229_v51 }
 0x130   : > { %v382_v58 = vpop.permute.xlu1 %381  ;;  %1138 = vrot.lane.b32.xlu1 %v1137_v11, %s2118_s7 }
 0x131   : > { %v386_v62 = vsel %vm385_vm2, %v380_v35, %v382_v58  ;;  %v387_v4 = vsel %vm385_vm2, %v382_v58, %v384_v26  ;;  %v516_v5 = vpop.permute.xlu0 %515  ;;  %780 = vrot.lane.b32.xlu0 %v779_v12, %s2119_s8 }
 0x132   : > { %390 = vst [vmem:[#allocation2 + $0x30] ss:$-12 sps:$4 sm:$0xe1] %v386_v62   ;;  %391 = vst [vmem:[#allocation2 + $0x38] ss:$-12 sps:$4 sm:$0xe1] %v387_v4   ;;  %v520_v9 = vsel %vm292_vm0, %v516_v5, %v518_v31 }
 0x133   : > { %524 = vst [vmem:[#allocation2 + $0x48] sm:$0x1e] %v520_v9 }
 0x134   : > { %v458_v10 = vpop.permute.xlu1 %457 }
 0x135   : > { %v461_v13 = vsel %vm246_vm1, %v456_v34, %v458_v10  ;;  %v462_v24 = vsel %vm246_vm1, %v458_v10, %v460_v16 }
 0x136   : > { %465 = vst [vmem:[#allocation2 + $0x40] ss:$-12 sps:$4 sm:$0xe1] %v461_v13   ;;  %466 = vst [vmem:[#allocation2 + $0x48] ss:$-12 sps:$4 sm:$0xe1] %v462_v24  }
 0x139   : > { %v665_v34 = vld [vmem:[#allocation2 + $0x28] sm:$0xff]  ;;  %v664_v37 = vld [vmem:[#allocation2 + $0x20] sm:$0xff] }
 0x13d   : > { %v667_v26 = vld [vmem:[#allocation2 + $0x38] sm:$0xff]  ;;  %v666_v30 = vld [vmem:[#allocation2 + $0x30] sm:$0xff] }
 0x13e   : > { %v2012_v2 = vpack.c.bf16 %v667_v26, %v665_v34  ;;  %v2014_v38 = vpack.c.bf16 %v666_v30, %v664_v37  ;;  %v2462_v34 = vld [vmem:[#allocation3 + $0xc] sm:$0xf] }
 0x187   : > { %v646_v14 = vpop.permute.xlu0 %645 }
 0x18a   : > { %v650_v0 = vpop.permute.xlu1 %649 }
 0x18b   : > { %v648_v18 = vpop.permute.xlu0 %647 }
 0x18c   : > { %v651_v19 = vsel %vm227_vm4, %v646_v14, %v648_v18  ;;  %v652_v20 = vsel %vm227_vm4, %v648_v18, %v650_v0 }
 0x18d   : > { %655 = vst [vmem:[#allocation2 + $0x10] ss:$-12 sps:$4 sm:$0xe1] %v651_v19   ;;  %656 = vst [vmem:[#allocation2 + $0x18] ss:$-12 sps:$4 sm:$0xe1] %v652_v20  }
 0x18e   : > { %v554_v21 = vpop.permute.xlu1 %553 }
 0x18f   : > { %v556_v63 = vsel %vm365_vm8, %v2343_v17, %v554_v21  ;;  %v610_v22 = vpop.permute.xlu0 %609 }
 0x190   : > { %560 = vst [vmem:[#allocation2 + $0x58] ss:$-12 sps:$4 sm:$0xe1] %v556_v63  }
 0x192   : > { %v612_v3 = vpop.permute.xlu1 %611 }
 0x193   : > { %v614_v23 = vsel %vm205_vm5, %v610_v22, %v612_v3  ;;  %v514_v25 = vpop.permute.xlu0 %513 }
 0x194   : > { %618 = vst [vmem:[#allocation2 + $0x58] sm:$0x1e] %v614_v23  ;;  %v519_v28 = vsel %vm292_vm0, %v514_v25, %v516_v5  ;;  %v661_v29 = vld [vmem:[#allocation2 + $0x8] sm:$0xff]  ;;  %v663_v31 = vld [vmem:[#allocation2 + $0x18] sm:$0xff]  ;;  %v660_v32 = vld [vmem:[#allocation2] sm:$0xff] }
 0x195   : > { %523 = vst [vmem:[#allocation2 + $0x40] sm:$0x1e] %v519_v28  ;;  %v2008_v16 = vpack.c.bf16 %v663_v31, %v661_v29  ;;  %v662_v27 = vld [vmem:[#allocation2 + $0x10] sm:$0xff]  ;;  %v1035_v23 = vld [vmem:[#allocation3 + $0xc] sm:$0xf] }
 0x196   : > { %v550_v15 = vpop.permute.xlu1 %549  ;;  %v2010_v33 = vpack.c.bf16 %v662_v27, %v660_v32  ;;  %v1989_v31 = vld [vmem:[%s2767_s0 + $0x11] ss:$8 sm:$0x3] }
 0x197   : > { %v555_v35 = vsel %vm365_vm8, %v550_v15, %v2343_v17  ;;  %v608_v43 = vpop.permute.xlu0 %607  ;;  %2009 = vmatprep.subr.bf16.mxu1 %v2008_v16  ;;  %2049 = vmatprep.subr.bf16.mxu0 %v2008_v16  ;;  %v669_v40 = vld [vmem:[#allocation2 + $0x48] sm:$0xff]  ;;  %v1186_v15 = vrot.slane %v1989_v31, %v2170_v6 }
 0x198   : > { %559 = vst [vmem:[#allocation2 + $0x50] ss:$-12 sps:$4 sm:$0xe1] %v555_v35   ;;  %v613_v36 = vsel %vm205_vm5, %v608_v43, %v610_v22  ;;  %2011 = vmatpush1.bf16.msra.mxu1 %v2010_v33  ;;  %2051 = vmatpush1.bf16.msra.mxu0 %v2010_v33 }
 0x199   : > { %617 = vst [vmem:[#allocation2 + $0x50] sm:$0x1e] %v613_v36  ;;  %2013 = vmatprep.subr.bf16.mxu1 %v2012_v2  ;;  %2053 = vmatprep.subr.bf16.mxu0 %v2012_v2 }
 0x19a   : > { %v862_v46 = vpop.permute.xlu1 %861 }
 0x19b   : > { %v671_v41 = vld [vmem:[#allocation2 + $0x58] sm:$0x1f]  ;;  %v863_v61 = vrot.slane %v862_v46, 4  ;;  %v919_v62 = vpop.permute.xlu0 %918 }
 0x19c   : > { %2015 = vmatpush1.bf16.msra.mxu1 %v2014_v38  ;;  %2055 = vmatpush1.bf16.msra.mxu0 %v2014_v38  ;;  %v2016_v17 = vpack.c.bf16 %v671_v41, %v669_v40  ;;  %v920_v9 = vrot.slane %v919_v62, 4 }
 0x19d   : > { %v864_v13 = vsel %vm292_vm0, %v863_v61, %v862_v46 }
 0x19e   : > { %2018 = vmatprep.subr.msk.bf16.mxu1 %vm2017_vm14, %v2016_v17  ;;  %v994_v47 = vpop.permute.xlu1 %993  ;;  %v921_v18 = vsel %vm246_vm1, %v920_v9, %v919_v62 }
 0x19f   : > { %v668_v42 = vld [vmem:[#allocation2 + $0x40] sm:$0xff]  ;;  %v995_v49 = vrot.slane %v994_v47, 4  ;;  %v1048_v20 = vpop.permute.xlu0 %1047 }
 0x1a0   : > { %v670_v39 = vld [vmem:[#allocation2 + $0x50] sm:$0x1f]  ;;  %v1049_v22 = vrot.slane %v1048_v20, 4 }
 0x1a1   : > { %v2019_v44 = vpack.c.bf16 %v670_v39, %v668_v42  ;;  %v996_v50 = vsel %vm385_vm2, %v995_v49, %v994_v47  ;;  %v2419_v51 = vmul.f32 %v995_v49, %v981_v48 }
 0x1a2   : > { %v1139_v3 = vpop.permute.xlu1 %1138  ;;  %v1050_v25 = vsel %vm327_vm3, %v1049_v22, %v1048_v20  ;;  %v1054_v28 = vmul.f32 %v1049_v22, %v1035_v23 }
 0x1a3   : > { %2021 = vmatpush1.bf16.msk.msra.mxu1 %vm2017_vm14, %v2019_v44  ;;  %1005 = vrot.lane.b32.xlu0 %v2419_v51, %s2122_s11  ;;  %v1140_v26 = vrot.slane %v1139_v3, 4  ;;  %v781_v29 = vpop.permute.xlu0 %780 }
 0x1a4   : > { %2023 = vmatprep.subr.bf16.mxu1 %v2008_v16  ;;  %v782_v27 = vrot.slane %v781_v29, 4  ;;  %v1069_v44 = vmax.f32 %v1054_v28, 0.0 }
 0x1a5   : > { %v1141_v16 = vsel %vm227_vm4, %v1140_v26, %v1139_v3 }
 0x1a6   : > { %1983 = vmatmul.mubr.msk.f32.vlgmr.msra.gmra.mrb[0].mxu1 %vm672_vm12, %v659_v45  ;;  %v783_v30 = vsel %vm205_vm5, %v782_v27, %v781_v29  ;;  %v1075_v46 = vrot.slane %v1069_v44, 3  ;;  %vm2774_vm12 = vcmask 769024  }
 0x1a7   : > { %2025 = vmatpush1.bf16.msra.mxu1 %v2010_v33  ;;  %1319 = vmatprep.mubr.f32.mxu1 %v2113_v1  ;;  %v1190_v33 = vrot.slane %v1989_v31, %v2172_v7  ;;  %vm2775_vm14 = vmmov %vm2774_vm12 }
 0x1a8   : > { %2027 = vmatprep.subr.bf16.mxu1 %v2012_v2  ;;  %v1126_v2 = vld [vmem:[#allocation3 + $0xc] sm:$0xf] }
 0x1a9   : > { %v1191_v36 = vcombine.low %v1186_v15, %v1190_v33  ;;  %v2472_v37 = vmul.f32 %v1140_v26, %v1126_v2 }
 0x1ab   : > { %2029 = vmatpush1.bf16.msra.mxu1 %v2014_v38 }
 0x279   : > { %v749_v52 = vpop.f32.mrb[0].mxu1 }
 0x27a   : > { %v756_v53 = vrot.slane %v749_v52, 3  ;;  %v968_v54 = vmax.f32 %v749_v52, 0.0  ;;  %v751_v55 = vpop.f32.mrb[1].mxu1 }
 0x27b   : > { %v757_v56 = vrot.slane %v751_v55, 3  ;;  %v2423_v57 = vcombine.low %v749_v52, %v751_v55  ;;  %v969_v1 = vmax.f32 %v751_v55, 0.0 }
 0x27c   : > { %760 = vst [vmem:[#allocation2 + $0x60] ss:$-12 sps:$4 sm:$0xe1] %v756_v53   ;;  %v972_v58 = vrot.slane %v968_v54, 3 }
 0x27d   : > { %761 = vst [vmem:[#allocation2 + $0x68] ss:$-12 sps:$4 sm:$0xe1] %v757_v56   ;;  %v973_v59 = vrot.slane %v969_v1, 3  ;;  %766 = vst [vmem:[#allocation3 + $0x4] sm:$0xff] %v2423_v57  ;;  %v2427_v60 = vmul.f32 %v996_v50, %v2423_v57  ;;  %960 = vrot.lane.b32.xlu1 %v2423_v57, %s2119_s8  ;;  %v1053_v32 = vmul.f32 %v1050_v25, %v2423_v57 }
 0x27e   : > { %976 = vst [vmem:[#allocation2 + $0x90] ss:$-12 sps:$4 sm:$0xe1] %v972_v58   ;;  %v2465_v35 = vmul.f32 %v1141_v16, %v2423_v57 }
 0x27f   : > { %977 = vst [vmem:[#allocation2 + $0x98] ss:$-12 sps:$4 sm:$0xe1] %v973_v59   ;;  %v1068_v54 = vmax.f32 %v1053_v32, 0.0 }
 0x281   : > { %v1073_v59 = vrot.slane %v1068_v54, 3 }
 0x283   : > { %v1230_v8 = vld [vmem:[#allocation2 + $0x50] sm:$0xff] }
 0x284   : > { %v767_v4 = vld [vmem:[#allocation3] sm:$0xff]  ;;  %v2431_v5 = vld [vmem:[#allocation3 + $0x8] sm:$0xf]  ;;  %v2032_v24 = vpack.c.bf16 %v1230_v8, %v668_v42 }
 0x285   : > { %818 = vrot.lane.b32.xlu0 %v2431_v5, %s2116_s5  ;;  %816 = vrot.lane.b32.xlu1 %v767_v4, %s2116_s5  ;;  %v1231_v10 = vld [vmem:[#allocation2 + $0x58] sm:$0xff]  ;;  %v867_v0 = vmul.f32 %v864_v13, %v767_v4  ;;  %v924_v63 = vmul.f32 %v921_v18, %v767_v4  ;;  %v828_v43 = vmax.f32 %v767_v4, 0.0  ;;  %v2474_v38 = vmul.f32 %v783_v30, %v767_v4 }
 0x286   : > { %v849_v11 = vld [vmem:[#allocation3 + $0x8] sm:$0xf]  ;;  %v2030_v12 = vpack.c.bf16 %v1231_v10, %v669_v40  ;;  %v1015_v40 = vmax.f32 %v2419_v51, 0.0  ;;  %v829_v45 = vmax.f32 %v2431_v5, 0.0  ;;  %v2497_v10 = vmax.f32 %v2423_v57, 0.0 }
 0x287   : > { %v2437_v14 = vmul.f32 %v863_v61, %v849_v11  ;;  %v906_v19 = vld [vmem:[#allocation3 + $0x8] sm:$0xf]  ;;  %v832_v41 = vcombine.high %v828_v43, %v828_v43  ;;  %v790_v17 = vmax.f32 %v2474_v38, 0.0  ;;  %v883_v48 = vmax.f32 %v867_v0, 0.0 }
 0x288   : > { %2031 = vmatprep.subr.bf16.mxu1 %v2030_v12  ;;  %2057 = vmatprep.subr.bf16.mxu0 %v2030_v12  ;;  %v2443_v21 = vmul.f32 %v920_v9, %v906_v19  ;;  %v1021_v42 = vrot.slane %v1015_v40, 7  ;;  %v768_v49 = vld [vmem:[#allocation3 + $0x8] sm:$0xf]  ;;  %v835_v51 = vrot.slane %v829_v45, 7  ;;  %v940_v53 = vmax.f32 %v924_v63, 0.0 }
 0x289   : > { %2033 = vmatpush1.bf16.msra.mxu1 %v2032_v24  ;;  %2059 = vmatpush1.bf16.msra.mxu0 %v2032_v24  ;;  %v834_v39 = vrot.slane %v832_v41, 7  ;;  %v795_v47 = vrot.slane %v790_v17, 3  ;;  %v787_v50 = vmul.f32 %v782_v27, %v768_v49  ;;  %v888_v52 = vrot.slane %v883_v48, 3 }
 0x28a   : > { %873 = vrot.lane.b32.xlu0 %v2437_v14, %s2120_s9  ;;  %871 = vrot.lane.b32.xlu1 %v867_v0, %s2120_s9  ;;  %v833_v55 = vrot.slane %v828_v43, 7  ;;  %v945_v56 = vrot.slane %v940_v53, 7  ;;  %v884_v61 = vmax.f32 %v2437_v14, 0.0  ;;  %v794_v62 = vcombine.high %v790_v17, %v790_v17 }
 0x28b   : > { %v791_v1 = vmax.f32 %v787_v50, 0.0  ;;  %v941_v8 = vmax.f32 %v2443_v21, 0.0  ;;  %v887_v9 = vcombine.high %v883_v48, %v883_v48  ;;  %v1014_v11 = vmax.f32 %v2427_v60, 0.0 }
 0x28c   : > { %v890_v4 = vrot.slane %v884_v61, 3  ;;  %v796_v5 = vrot.slane %v794_v62, 3  ;;  %v944_v24 = vcombine.high %v940_v53, %v940_v53  ;;  %v1109_v18 = vcombine.high %v2497_v10, %v2497_v10 }
 0x28d   : > { %v797_v58 = vrot.slane %v791_v1, 3  ;;  %v947_v12 = vrot.slane %v941_v8, 7  ;;  %v889_v13 = vrot.slane %v887_v9, 3  ;;  %v1019_v14 = vrot.slane %v1014_v11, 7 }
 0x28e   : > { %930 = vrot.lane.b32.xlu0 %v2443_v21, %s2121_s10  ;;  %928 = vrot.lane.b32.xlu1 %v924_v63, %s2121_s10  ;;  %v946_v0 = vrot.slane %v944_v24, 7  ;;  %v1018_v19 = vcombine.high %v1014_v11, %v1014_v11  ;;  %v1006_v63 = vpop.permute.xlu0 %1005 }
 0x290   : > { %v1020_v20 = vrot.slane %v1018_v19, 7 }
 0x292   : > { %1003 = vrot.lane.b32.xlu0 %v2427_v60, %s2122_s11  ;;  %1094 = vrot.lane.b32.xlu1 %v2423_v57, %s2123_s14  ;;  %v1111_v57 = vrot.slane %v1109_v18, 7  ;;  %v1072_v60 = vcombine.high %v1068_v54, %v1068_v54 }
 0x294   : > { %v1074_v21 = vrot.slane %v1072_v60, 3 }
 0x296   : > { %1059 = vrot.lane.b32.xlu0 %v1054_v28, %s2124_s17  ;;  %1057 = vrot.lane.b32.xlu1 %v1053_v32, %s2124_s17 }
 0x29a   : > { %1096 = vrot.lane.b32.xlu0 %v2462_v34, %s2123_s14  ;;  %1148 = vrot.lane.b32.xlu1 %v2465_v35, %s2125_s18 }
 0x29e   : > { %1150 = vrot.lane.b32.xlu0 %v2472_v37, %s2125_s18  ;;  %1192 = vrot.lane.b32.xlu1 %v1191_v36, %s2119_s8 }
 0x2a2   : > { %1026 = vrot.lane.b32.xlu0 %v1021_v42, %s2116_s5  ;;  %838 = vrot.lane.b32.xlu1 %v834_v39, %s2126_s19 }
 0x2a6   : > { %1080 = vrot.lane.b32.xlu0 %v1075_v46, %s2114_s30  ;;  %798 = vrot.lane.b32.xlu1 %v795_v47, %s2118_s7 }
 0x2aa   : > { %840 = vrot.lane.b32.xlu0 %v835_v51, %s2126_s19  ;;  %891 = vrot.lane.b32.xlu1 %v888_v52, %s2117_s6 }
 0x2ae   : > { %836 = vrot.lane.b32.xlu0 %v833_v55, %s2126_s19  ;;  %948 = vrot.lane.b32.xlu1 %v945_v56, %s2115_s4 }
 0x2b2   : > { %802 = vrot.lane.b32.xlu0 %v797_v58, %s2118_s7  ;;  %1076 = vrot.lane.b32.xlu1 %v1073_v59, %s2114_s30 }
 0x2b6   : > { %895 = vrot.lane.b32.xlu0 %v890_v4, %s2117_s6  ;;  %800 = vrot.lane.b32.xlu1 %v796_v5, %s2118_s7 }
 0x2ba   : > { %952 = vrot.lane.b32.xlu0 %v947_v12, %s2115_s4  ;;  %893 = vrot.lane.b32.xlu1 %v889_v13, %s2117_s6 }
 0x2be   : > { %1022 = vrot.lane.b32.xlu0 %v1019_v14, %s2116_s5  ;;  %950 = vrot.lane.b32.xlu1 %v946_v0, %s2115_s4 }
 0x2c2   : > { %1115 = vrot.lane.b32.xlu0 %v1111_v57, %s2121_s10  ;;  %1024 = vrot.lane.b32.xlu1 %v1020_v20, %s2116_s5 }
 0x2c6   : > { %1078 = vrot.lane.b32.xlu1 %v1074_v21, %s2114_s30 }
 0x2ef   : > { %v961_v22 = vpop.permute.xlu1 %960 }
 0x2f0   : > { %v962_v17 = vrot.slane %v961_v22, 4 }
 0x2f2   : > { %v963_v51 = vsel %vm205_vm5, %v962_v17, %v961_v22 }
 0x2f7   : > { %v819_v3 = vpop.permute.xlu0 %818  ;;  %v817_v23 = vpop.permute.xlu1 %816 }
 0x2f8   : > { %v821_v25 = vrot.slane %v819_v3, 4  ;;  %v820_v26 = vrot.slane %v817_v23, 4  ;;  %v827_v33 = vadd.f32 %v819_v3, %v787_v50 }
 0x2fa   : > { %v822_v28 = vsel %vm244_vm6, %v820_v26, %v821_v25 }
 0x2fb   : > { %v823_v27 = vsel %vm246_vm1, %v817_v23, %v822_v28  ;;  %v1159_v28 = vmax.f32 %v2465_v35, 0.0  ;;  %v1160_v35 = vmax.f32 %v2472_v37, 0.0 }
 0x2fc   : > { %v874_v29 = vpop.permute.xlu0 %873  ;;  %v872_v31 = vpop.permute.xlu1 %871  ;;  %v826_v36 = vadd.f32 %v823_v27, %v2474_v38 }
 0x2fd   : > { %v876_v32 = vrot.slane %v874_v29, 4  ;;  %v875_v16 = vrot.slane %v872_v31, 4  ;;  %v882_v42 = vadd.f32 %v874_v29, %v827_v33  ;;  %v1106_v29 = vmax.f32 %v2462_v34, 0.0 }
 0x2ff   : > { %v877_v15 = vsel %vm244_vm6, %v875_v16, %v876_v32  ;;  %v1112_v33 = vrot.slane %v1106_v29, 7 }
 0x300   : > { %v878_v43 = vsel %vm307_vm7, %v872_v31, %v877_v15  ;;  %v931_v2 = vpop.permute.xlu0 %930  ;;  %v929_v30 = vpop.permute.xlu1 %928 }
 0x301   : > { %v933_v40 = vrot.slane %v931_v2, 4  ;;  %v932_v41 = vrot.slane %v929_v30, 4  ;;  %v881_v39 = vadd.f32 %v878_v43, %v826_v36  ;;  %v939_v45 = vadd.f32 %v931_v2, %v882_v42 }
 0x302   : > { %v1163_v2 = vcombine.high %v1159_v28, %v1159_v28  ;;  %v1166_v42 = vrot.slane %v1160_v35, 3 }
 0x303   : > { %v934_v44 = vsel %vm244_vm6, %v932_v41, %v933_v40  ;;  %v967_v54 = vadd.f32 %v962_v17, %v939_v45 }
 0x304   : > { %v935_v46 = vsel %vm365_vm8, %v929_v30, %v934_v44  ;;  %v1004_v47 = vpop.permute.xlu0 %1003  ;;  %v1095_v48 = vpop.permute.xlu1 %1094  ;;  %v1165_v40 = vrot.slane %v1163_v2, 3  ;;  %v1110_v44 = vrot.slane %v2497_v10, 7 }
 0x305   : > { %v938_v49 = vadd.f32 %v935_v46, %v881_v39  ;;  %v1007_v50 = vrot.slane %v1004_v47, 4  ;;  %v1098_v58 = vrot.slane %v1095_v48, 4  ;;  %v1164_v46 = vrot.slane %v1159_v28, 3 }
 0x307   : > { %v966_v52 = vadd.f32 %v963_v51, %v938_v49  ;;  %v1008_v53 = vsel %vm440_vm9, %v1007_v50, %v1004_v47  ;;  %v1009_v38 = vsel %vm440_vm9, %v1007_v50, %v1006_v63  ;;  %v1099_v12 = vsel %vm534_vm11, %v1098_v58, %v1095_v48  ;;  %v1994_v47 = vld [vmem:[%s2767_s0 + $0x2] ss:$8 sm:$0x3]  ;;  %v1995_v48 = vld [vmem:[%s2767_s0 + $0x3] ss:$8 sm:$0x3] }
 0x308   : > { %v1060_v55 = vpop.permute.xlu0 %1059  ;;  %v1058_v56 = vpop.permute.xlu1 %1057  ;;  %v1013_v61 = vadd.f32 %v1009_v38, %v967_v54  ;;  %v1425_v51 = vrot.slane %v1994_v47, %v2170_v6  ;;  %v1429_v10 = vrot.slane %v1994_v47, %v2172_v7  ;;  %v1996_v38 = vld [vmem:[%s2767_s0 + $0x5] ss:$8 sm:$0x3]  ;;  %v1997_v54 = vld [vmem:[%s2767_s0 + $0x6] ss:$8 sm:$0x3] }
 0x309   : > { %v1012_v1 = vadd.f32 %v1008_v53, %v966_v52  ;;  %v1061_v59 = vrot.slane %v1058_v56, 4  ;;  %v1480_v52 = vrot.slane %v1995_v48, %v2170_v6  ;;  %v1484_v53 = vrot.slane %v1995_v48, %v2172_v7 }
 0x30b   : > { %v1062_v62 = vsel %vm498_vm10, %v1061_v59, %v1058_v56  ;;  %v1063_v4 = vsel %vm498_vm10, %v1061_v59, %v1060_v55  ;;  %v1998_v59 = vld [vmem:[%s2767_s0 + $0x10] ss:$8 sm:$0x3] }
 0x30c   : > { %v1066_v5 = vadd.f32 %v1062_v62, %v1012_v1  ;;  %v1097_v8 = vpop.permute.xlu0 %1096  ;;  %v1067_v9 = vadd.f32 %v1063_v4, %v1013_v61  ;;  %v1149_v11 = vpop.permute.xlu1 %1148  ;;  %v1555_v1 = vrot.slane %v1996_v38, %v2170_v6  ;;  %v1339_v61 = vld [vmem:[%s2767_s0] ss:$8 sm:$0x3]  ;;  %v1430_v62 = vcombine.low %v1425_v51, %v1429_v10 }
 0x30d   : > { %v1100_v13 = vsel %vm534_vm11, %v1098_v58, %v1097_v8  ;;  %v1152_v24 = vrot.slane %v1149_v11, 4  ;;  %v1559_v58 = vrot.slane %v1996_v38, %v2172_v7  ;;  %v1485_v4 = vcombine.low %v1480_v52, %v1484_v53 }
 0x30e   : > { %v1103_v14 = vadd.f32 %v1099_v12, %v1066_v5  ;;  %v1104_v18 = vadd.f32 %v1100_v13, %v1067_v9  ;;  %v1611_v5 = vrot.slane %v1997_v54, %v2170_v6  ;;  %v1615_v8 = vrot.slane %v1997_v54, %v2172_v7 }
 0x30f   : > { %v1153_v0 = vsel %vm2774_vm12, %v1152_v24, %v1149_v11  ;;  %vm2776_vm12 = vcmask 130048   ;;  %v1560_v9 = vcombine.low %v1555_v1, %v1559_v58  ;;  %v1702_v11 = vrot.slane %v1998_v59, %v2170_v6  ;;  %v1990_v58 = vld [vmem:[%s2769_s2 + $0x8] sm:$0xf] }
 0x310   : > { %v1151_v19 = vpop.permute.xlu0 %1150  ;;  %v1193_v57 = vpop.permute.xlu1 %1192  ;;  %v1157_v21 = vadd.f32 %v1153_v0, %v1103_v14  ;;  %v1706_v12 = vrot.slane %v1998_v59, %v2172_v7  ;;  %v1344_v14 = vrot.slane %v1339_v61, %v2170_v6  ;;  %v1348_v0 = vrot.slane %v1339_v61, %v2172_v7 }
 0x311   : > { %v1154_v20 = vsel %vm2775_vm14, %v1152_v24, %v1151_v19  ;;  %v1194_v60 = vrot.slane %v1193_v57, 4  ;;  %vm2777_vm14 = vmmov %vm2776_vm12  ;;  %v1616_v24 = vcombine.low %v1611_v5, %v1615_v8 }
 0x312   : > { %v1158_v63 = vadd.f32 %v1154_v20, %v1104_v18 }
 0x313   : > { %v1195_v22 = vsel %vm205_vm5, %v1194_v60, %v1193_v57 }
 0x314   : > { %v1198_v3 = vmul.f32 %v1195_v22, %v1157_v21  ;;  %v1199_v23 = vmul.f32 %v1194_v60, %v1158_v63  ;;  %v2526_v25 = vpop.permute.xlu0 %1026  ;;  %v839_v26 = vpop.permute.xlu1 %838  ;;  %v1707_v60 = vcombine.low %v1702_v11, %v1706_v12  ;;  %v1349_v21 = vcombine.low %v1344_v14, %v1348_v0 }
 0x316   : > { %v1205_v31 = vrot.slane %v1199_v23, 7  ;;  %v1202_v32 = vcombine.high %v1198_v3, %v1198_v3  ;;  %v1203_v43 = vrot.slane %v1198_v3, 7 }
 0x318   : > { %v2530_v16 = vpop.permute.xlu0 %1080  ;;  %1210 = vrot.lane.b32.xlu0 %v1205_v31, %s2118_s7  ;;  %v799_v27 = vpop.permute.xlu1 %798  ;;  %v1204_v15 = vrot.slane %v1202_v32, 7 }
 0x31a   : > { %1208 = vrot.lane.b32.xlu1 %v1204_v15, %s2118_s7 }
 0x31c   : > { %v841_v30 = vpop.permute.xlu0 %840  ;;  %1206 = vrot.lane.b32.xlu0 %v1203_v43, %s2118_s7  ;;  %v892_v36 = vpop.permute.xlu1 %891 }
 0x31d   : > { %v843_v34 = vsel %vm2776_vm12, %v839_v26, %v841_v30  ;;  %vm1248_vm12 = vcmask 1040384  }
 0x31e   : > { %847 = vst [vmem:[#allocation2 + $0x78] sm:$0x1e] %v843_v34  ;;  %1117 = vrot.lane.b32.xlu1 %v1112_v33, %s2121_s10 }
 0x320   : > { %v837_v41 = vpop.permute.xlu0 %836  ;;  %1169 = vrot.lane.b32.xlu0 %v1165_v40, %s2119_s8  ;;  %v949_v17 = vpop.permute.xlu1 %948 }
 0x321   : > { %v842_v39 = vsel %vm2777_vm14, %v837_v41, %v839_v26  ;;  %vm2043_vm14 = vmpackc.low %vm1248_vm12, %vm2128_vm13 }
 0x322   : > { %846 = vst [vmem:[#allocation2 + $0x70] sm:$0x1e] %v842_v39  ;;  %1171 = vrot.lane.b32.xlu1 %v1166_v42, %s2119_s8 }
 0x324   : > { %v803_v45 = vpop.permute.xlu0 %802  ;;  %1113 = vrot.lane.b32.xlu0 %v1110_v44, %s2121_s10  ;;  %v1077_v37 = vpop.permute.xlu1 %1076 }
 0x326   : > { %1167 = vrot.lane.b32.xlu1 %v1164_v46, %s2119_s8 }
 0x328   : > { %v896_v49 = vpop.permute.xlu0 %895  ;;  %v801_v50 = vpop.permute.xlu1 %800  ;;  %1431 = vrot.lane.b32.xlu0 %v1430_v62, %s2114_s30 }
 0x329   : > { %v804_v55 = vsel %vm227_vm4, %v799_v27, %v801_v50  ;;  %v805_v56 = vsel %vm227_vm4, %v801_v50, %v803_v45 }
 0x32a   : > { %808 = vst [vmem:[#allocation2 + $0x70] ss:$-12 sps:$4 sm:$0xe1] %v804_v55   ;;  %809 = vst [vmem:[#allocation2 + $0x78] ss:$-12 sps:$4 sm:$0xe1] %v805_v56   ;;  %1486 = vrot.lane.b32.xlu1 %v1485_v4, %s2116_s5 }
 0x32b   : > { %v1549_v4 = vld [vmem:[#allocation3 + $0xc] sm:$0xf] }
 0x32c   : > { %v894_v13 = vpop.permute.xlu1 %893  ;;  %v953_v57 = vpop.permute.xlu0 %952  ;;  %1561 = vrot.lane.b32.xlu0 %v1560_v9, %s2115_s4 }
 0x32d   : > { %v897_v18 = vsel %vm327_vm3, %v892_v36, %v894_v13  ;;  %v898_v19 = vsel %vm327_vm3, %v894_v13, %v896_v49 }
 0x32e   : > { %901 = vst [vmem:[#allocation2 + $0x80] ss:$-12 sps:$4 sm:$0xe1] %v897_v18   ;;  %902 = vst [vmem:[#allocation2 + $0x88] ss:$-12 sps:$4 sm:$0xe1] %v898_v19   ;;  %1617 = vrot.lane.b32.xlu1 %v1616_v24, %s2117_s6 }
 0x330   : > { %v951_v20 = vpop.permute.xlu1 %950  ;;  %v1023_v3 = vpop.permute.xlu0 %1022  ;;  %1708 = vrot.lane.b32.xlu0 %v1707_v60, %s2118_s7 }
 0x331   : > { %v954_v63 = vsel %vm385_vm2, %v949_v17, %v951_v20  ;;  %v955_v22 = vsel %vm385_vm2, %v951_v20, %v953_v57 }
 0x332   : > { %958 = vst [vmem:[#allocation2 + $0x80] sm:$0x1e] %v954_v63  ;;  %959 = vst [vmem:[#allocation2 + $0x88] sm:$0x1e] %v955_v22  ;;  %1350 = vrot.lane.b32.xlu1 %v1349_v21, %s2119_s8 }
 0x334   : > { %v1025_v23 = vpop.permute.xlu1 %1024  ;;  %v1116_v27 = vpop.permute.xlu0 %1115 }
 0x335   : > { %v1028_v26 = vsel %vm246_vm1, %v1023_v3, %v1025_v23  ;;  %v1029_v28 = vsel %vm246_vm1, %v1025_v23, %v2526_v25  ;;  %v1235_v41 = vld [vmem:[#allocation2 + $0x78] sm:$0xff] }
 0x336   : > { %1032 = vst [vmem:[#allocation2 + $0x90] sm:$0x1e] %v1028_v26  ;;  %1033 = vst [vmem:[#allocation2 + $0x98] sm:$0x1e] %v1029_v28 }
 0x338   : > { %v1079_v29 = vpop.permute.xlu1 %1078 }
 0x339   : > { %v1082_v31 = vsel %vm292_vm0, %v1077_v37, %v1079_v29  ;;  %v1083_v32 = vsel %vm292_vm0, %v1079_v29, %v2530_v16  ;;  %v1234_v37 = vld [vmem:[#allocation2 + $0x70] sm:$0xff]  ;;  %v1237_v48 = vld [vmem:[#allocation2 + $0x88] sm:$0xff]  ;;  %v1236_v10 = vld [vmem:[#allocation2 + $0x80] sm:$0xff] }
 0x33a   : > { %1086 = vst [vmem:[#allocation2 + $0xa0] ss:$-12 sps:$4 sm:$0xe1] %v1082_v31   ;;  %1087 = vst [vmem:[#allocation2 + $0xa8] ss:$-12 sps:$4 sm:$0xe1] %v1083_v32  }
 0x341   : > { %v1239_v39 = vld [vmem:[#allocation2 + $0x98] sm:$0xff]  ;;  %v1238_v51 = vld [vmem:[#allocation2 + $0x90] sm:$0xff] }
 0x342   : > { %v2038_v50 = vpack.c.bf16 %v1239_v39, %v1237_v48  ;;  %v2040_v52 = vpack.c.bf16 %v1238_v51, %v1236_v10  ;;  %v2649_v39 = vld [vmem:[#allocation3 + $0xc] sm:$0xf] }
 0x38a   : > { %v1211_v15 = vpop.permute.xlu0 %1210 }
 0x38c   : > { %v1209_v33 = vpop.permute.xlu1 %1208 }
 0x38d   : > { %v1213_v43 = vsel %vm227_vm4, %v1209_v33, %v1211_v15 }
 0x38e   : > { %1217 = vst [vmem:[#allocation2 + $0x68] sm:$0x1e] %v1213_v43  ;;  %v1207_v2 = vpop.permute.xlu0 %1206 }
 0x38f   : > { %v1212_v30 = vsel %vm227_vm4, %v1207_v2, %v1209_v33  ;;  %v1605_v2 = vld [vmem:[#allocation3 + $0xc] sm:$0xf] }
 0x390   : > { %1216 = vst [vmem:[#allocation2 + $0x60] sm:$0x1e] %v1212_v30  ;;  %v1118_v25 = vpop.permute.xlu1 %1117 }
 0x391   : > { %v1120_v36 = vsel %vm365_vm8, %v1116_v27, %v1118_v25 }
 0x392   : > { %1124 = vst [vmem:[#allocation2 + $0xa8] sm:$0x1e] %v1120_v36  ;;  %v1170_v35 = vpop.permute.xlu0 %1169 }
 0x394   : > { %v1172_v34 = vpop.permute.xlu1 %1171 }
 0x395   : > { %v1174_v16 = vsel %vm205_vm5, %v1170_v35, %v1172_v34  ;;  %v1233_v40 = vld [vmem:[#allocation2 + $0x68] sm:$0xff]  ;;  %v1999_v34 = vld [vmem:[%s2767_s0 + $0x11] ss:$8 sm:$0x3] }
 0x396   : > { %1178 = vst [vmem:[#allocation2 + $0xb8] ss:$-12 sps:$4 sm:$0xe1] %v1174_v16   ;;  %v1114_v17 = vpop.permute.xlu0 %1113  ;;  %v2034_v42 = vpack.c.bf16 %v1235_v41, %v1233_v40 }
 0x397   : > { %v1119_v44 = vsel %vm365_vm8, %v1114_v17, %v1116_v27  ;;  %v1232_v45 = vld [vmem:[#allocation2 + $0x60] sm:$0xff]  ;;  %v1754_v17 = vrot.slane %v1999_v34, %v2170_v6 }
 0x398   : > { %1123 = vst [vmem:[#allocation2 + $0xa0] sm:$0x1e] %v1119_v44  ;;  %v1168_v46 = vpop.permute.xlu1 %1167  ;;  %2035 = vmatprep.subr.bf16.mxu1 %v2034_v42  ;;  %2061 = vmatprep.subr.bf16.mxu0 %v2034_v42  ;;  %v2036_v47 = vpack.c.bf16 %v1234_v37, %v1232_v45  ;;  %v1758_v42 = vrot.slane %v1999_v34, %v2172_v7  ;;  %v1696_v37 = vld [vmem:[#allocation3 + $0xc] sm:$0xf] }
 0x399   : > { %v1173_v49 = vsel %vm205_vm5, %v1168_v46, %v1170_v35 }
 0x39a   : > { %1177 = vst [vmem:[#allocation2 + $0xb0] ss:$-12 sps:$4 sm:$0xe1] %v1173_v49   ;;  %2037 = vmatpush1.bf16.msra.mxu1 %v2036_v47  ;;  %2063 = vmatpush1.bf16.msra.mxu0 %v2036_v47  ;;  %v1432_v59 = vpop.permute.xlu0 %1431  ;;  %v1759_v47 = vcombine.low %v1754_v17, %v1758_v42 }
 0x39b   : > { %2039 = vmatprep.subr.bf16.mxu1 %v2038_v50  ;;  %2065 = vmatprep.subr.bf16.mxu0 %v2038_v50  ;;  %v1433_v20 = vrot.slane %v1432_v59, 4 }
 0x39c   : > { %v1487_v60 = vpop.permute.xlu1 %1486 }
 0x39d   : > { %v2598_v53 = vld [vmem:[#allocation2 + $0xa8] sm:$0xff]  ;;  %v1243_v38 = vld [vmem:[#allocation2 + $0xb8] sm:$0x1]  ;;  %v1488_v21 = vrot.slane %v1487_v60, 4  ;;  %v1434_v23 = vsel %vm292_vm0, %v1433_v20, %v1432_v59 }
 0x39e   : > { %2041 = vmatpush1.bf16.msra.mxu1 %v2040_v52  ;;  %2067 = vmatpush1.bf16.msra.mxu0 %v2040_v52  ;;  %v2042_v54 = vpack.c.bf16 %v1243_v38, %v2598_v53  ;;  %v1562_v61 = vpop.permute.xlu0 %1561 }
 0x39f   : > { %v1563_v62 = vrot.slane %v1562_v61, 4  ;;  %v1489_v29 = vsel %vm246_vm1, %v1488_v21, %v1487_v60 }
 0x3a0   : > { %2044 = vmatprep.subr.msk.bf16.mxu1 %vm2043_vm14, %v2042_v54  ;;  %v1618_v32 = vpop.permute.xlu1 %1617 }
 0x3a1   : > { %v2602_v55 = vld [vmem:[#allocation2 + $0xa0] sm:$0xff]  ;;  %v1242_v56 = vld [vmem:[#allocation2 + $0xb0] sm:$0x1]  ;;  %v1564_v5 = vsel %vm385_vm2, %v1563_v62, %v1562_v61  ;;  %v2609_v8 = vmul.f32 %v1563_v62, %v1549_v4  ;;  %v1619_v33 = vrot.slane %v1618_v32, 4 }
 0x3a2   : > { %v2045_v1 = vpack.c.bf16 %v1242_v56, %v2602_v55  ;;  %v1709_v43 = vpop.permute.xlu0 %1708 }
 0x3a3   : > { %1573 = vrot.lane.b32.xlu1 %v2609_v8, %s2122_s11  ;;  %v1620_v30 = vsel %vm327_vm3, %v1619_v33, %v1618_v32  ;;  %v1710_v25 = vrot.slane %v1709_v43, 4  ;;  %v1624_v36 = vmul.f32 %v1619_v33, %v1605_v2  ;;  %v1583_v6 = vmax.f32 %v2609_v8, 0.0 }
 0x3a4   : > { %2047 = vmatpush1.bf16.msk.msra.mxu1 %vm2043_vm14, %v2045_v1  ;;  %v1351_v35 = vpop.permute.xlu1 %1350 }
 0x3a5   : > { %v1711_v40 = vsel %vm227_vm4, %v1710_v25, %v1709_v43  ;;  %v1352_v41 = vrot.slane %v1351_v35, 4  ;;  %v2660_v48 = vmul.f32 %v1710_v25, %v1696_v37  ;;  %v1589_v50 = vrot.slane %v1583_v6, 3 }
 0x3a6   : > { %v1639_v51 = vmax.f32 %v1624_v36, 0.0 }
 0x3a7   : > { %1993 = vmatmul.mubr.msk.f32.vlgmr.msra.gmra.mrb[2].mxu1 %vm1244_vm15, %v1990_v58  ;;  %v1353_v46 = vsel %vm205_vm5, %v1352_v41, %v1351_v35 }
 0x3a8   : > { %v1645_v38 = vrot.slane %v1639_v51, 7 }
 0x47a   : > { %v1321_v9 = vpop.f32.mrb[2].mxu1 }
 0x47b   : > { %v1328_v11 = vrot.slane %v1321_v9, 7  ;;  %v1538_v12 = vmax.f32 %v1321_v9, 0.0  ;;  %v1323_v13 = vpop.f32.mrb[3].mxu1 }
 0x47c   : > { %v1329_v24 = vrot.slane %v1323_v13, 7  ;;  %v2613_v14 = vcombine.low %v1321_v9, %v1323_v13  ;;  %v1539_v0 = vmax.f32 %v1323_v13, 0.0 }
 0x47d   : > { %1332 = vst [vmem:[#allocation2 + $0xb0] sm:$0x1e] %v1328_v11  ;;  %v1542_v18 = vrot.slane %v1538_v12, 7 }
 0x47e   : > { %1333 = vst [vmem:[#allocation2 + $0xb8] sm:$0x1e] %v1329_v24  ;;  %v1543_v19 = vrot.slane %v1539_v0, 7  ;;  %1336 = vst [vmem:[#allocation3 + $0x4] sm:$0xff] %v2613_v14  ;;  %v2617_v57 = vmul.f32 %v1564_v5, %v2613_v14  ;;  %1530 = vrot.lane.b32.xlu0 %v2613_v14, %s2119_s8  ;;  %v1623_v16 = vmul.f32 %v1620_v30, %v2613_v14 }
 0x47f   : > { %1546 = vst [vmem:[#allocation2 + $0xe0] sm:$0x1e] %v1542_v18  ;;  %v2652_v44 = vmul.f32 %v1711_v40, %v2613_v14 }
 0x480   : > { %1547 = vst [vmem:[#allocation2 + $0xe8] sm:$0x1e] %v1543_v19  ;;  %v2677_v13 = vmax.f32 %v2617_v57, 0.0 }
 0x482   : > { %v1586_v60 = vcombine.high %v2677_v13, %v2677_v13 }
 0x485   : > { %v1337_v63 = vld [vmem:[#allocation3] sm:$0xff]  ;;  %v1381_v22 = vld [vmem:[#allocation3 + $0x8] sm:$0xf] }
 0x486   : > { %1386 = vrot.lane.b32.xlu1 %v1381_v22, %s2116_s5  ;;  %1384 = vrot.lane.b32.xlu0 %v1337_v63, %s2116_s5  ;;  %v1419_v3 = vld [vmem:[#allocation3 + $0x8] sm:$0xf]  ;;  %v1437_v28 = vmul.f32 %v1434_v23, %v1337_v63  ;;  %v1492_v15 = vmul.f32 %v1489_v29, %v1337_v63  ;;  %v1396_v45 = vmax.f32 %v1337_v63, 0.0  ;;  %v2662_v7 = vmul.f32 %v1353_v46, %v1337_v63  ;;  %v1574_v29 = vpop.permute.xlu1 %1573 }
 0x487   : > { %v2624_v26 = vmul.f32 %v1433_v20, %v1419_v3  ;;  %v1474_v31 = vld [vmem:[#allocation3 + $0x8] sm:$0xf]  ;;  %v1397_v1 = vmax.f32 %v1381_v22, 0.0  ;;  %v2682_v20 = vmax.f32 %v1623_v16, 0.0 }
 0x488   : > { %v2630_v27 = vmul.f32 %v1488_v21, %v1474_v31  ;;  %v1400_v49 = vcombine.high %v1396_v45, %v1396_v45  ;;  %v1360_v10 = vmax.f32 %v2662_v7, 0.0  ;;  %v1338_v54 = vld [vmem:[#allocation3 + $0x8] sm:$0xf]  ;;  %v1453_v58 = vmax.f32 %v1437_v28, 0.0 }
 0x489   : > { %v1357_v59 = vmul.f32 %v1352_v41, %v1338_v54  ;;  %v1403_v62 = vrot.slane %v1397_v1, 3  ;;  %v1401_v9 = vrot.slane %v1396_v45, 3  ;;  %v1508_v11 = vmax.f32 %v1492_v15, 0.0 }
 0x48a   : > { %1443 = vrot.lane.b32.xlu1 %v2624_v26, %s2120_s9  ;;  %1441 = vrot.lane.b32.xlu0 %v1437_v28, %s2120_s9  ;;  %v1402_v52 = vrot.slane %v1400_v49, 3  ;;  %v1365_v56 = vrot.slane %v1360_v10, 7  ;;  %v1364_v61 = vcombine.high %v1360_v10, %v1360_v10  ;;  %v1458_v4 = vrot.slane %v1453_v58, 7 }
 0x48b   : > { %v1361_v5 = vmax.f32 %v1357_v59, 0.0  ;;  %v1457_v12 = vcombine.high %v1453_v58, %v1453_v58  ;;  %v1454_v18 = vmax.f32 %v2624_v26, 0.0  ;;  %v1512_v19 = vcombine.high %v1508_v11, %v1508_v11 }
 0x48c   : > { %v1366_v8 = vrot.slane %v1364_v61, 7  ;;  %v1509_v22 = vmax.f32 %v2630_v27, 0.0  ;;  %v1642_v3 = vcombine.high %v2682_v20, %v2682_v20  ;;  %v1513_v28 = vrot.slane %v1508_v11, 3 }
 0x48d   : > { %v1367_v24 = vrot.slane %v1361_v5, 7  ;;  %v1459_v0 = vrot.slane %v1457_v12, 7  ;;  %v1460_v21 = vrot.slane %v1454_v18, 7  ;;  %v1514_v63 = vrot.slane %v1512_v19, 3 }
 0x48e   : > { %1498 = vrot.lane.b32.xlu1 %v2630_v27, %s2121_s10  ;;  %1496 = vrot.lane.b32.xlu0 %v1492_v15, %s2121_s10  ;;  %v1515_v23 = vrot.slane %v1509_v22, 3  ;;  %v1644_v26 = vrot.slane %v1642_v3, 7 }
 0x492   : > { %1571 = vrot.lane.b32.xlu1 %v2617_v57, %s2122_s11  ;;  %1662 = vrot.lane.b32.xlu0 %v2613_v14, %s2123_s14  ;;  %v1588_v57 = vrot.slane %v1586_v60, 3 }
 0x496   : > { %1629 = vrot.lane.b32.xlu1 %v1624_v36, %s2124_s17  ;;  %1627 = vrot.lane.b32.xlu0 %v1623_v16, %s2124_s17 }
 0x49a   : > { %1664 = vrot.lane.b32.xlu1 %v2649_v39, %s2123_s14  ;;  %1718 = vrot.lane.b32.xlu0 %v2652_v44, %s2125_s18 }
 0x49e   : > { %1720 = vrot.lane.b32.xlu1 %v2660_v48, %s2125_s18  ;;  %1760 = vrot.lane.b32.xlu0 %v1759_v47, %s2119_s8 }
 0x4a2   : > { %1594 = vrot.lane.b32.xlu0 %v1589_v50, %s2116_s5  ;;  %1406 = vrot.lane.b32.xlu1 %v1402_v52, %s2126_s19 }
 0x4a6   : > { %1650 = vrot.lane.b32.xlu0 %v1645_v38, %s2114_s30  ;;  %1368 = vrot.lane.b32.xlu1 %v1365_v56, %s2118_s7 }
 0x4aa   : > { %1408 = vrot.lane.b32.xlu0 %v1403_v62, %s2126_s19  ;;  %1461 = vrot.lane.b32.xlu1 %v1458_v4, %s2117_s6 }
 0x4ae   : > { %1404 = vrot.lane.b32.xlu0 %v1401_v9, %s2126_s19  ;;  %1370 = vrot.lane.b32.xlu1 %v1366_v8, %s2118_s7 }
 0x4b2   : > { %1372 = vrot.lane.b32.xlu0 %v1367_v24, %s2118_s7  ;;  %1463 = vrot.lane.b32.xlu1 %v1459_v0, %s2117_s6 }
 0x4b6   : > { %1465 = vrot.lane.b32.xlu0 %v1460_v21, %s2117_s6  ;;  %1518 = vrot.lane.b32.xlu1 %v1514_v63, %s2115_s4 }
 0x4ba   : > { %1520 = vrot.lane.b32.xlu0 %v1515_v23, %s2115_s4  ;;  %1592 = vrot.lane.b32.xlu1 %v1588_v57, %s2116_s5 }
 0x4be   : > { %1516 = vrot.lane.b32.xlu0 %v1513_v28, %s2115_s4  ;;  %1648 = vrot.lane.b32.xlu1 %v1644_v26, %s2114_s30 }
 0x4f0   : > { %v1531_v31 = vpop.permute.xlu0 %1530 }
 0x4f1   : > { %v1532_v46 = vrot.slane %v1531_v31, 4 }
 0x4f3   : > { %v1533_v56 = vsel %vm205_vm5, %v1532_v46, %v1531_v31  ;;  %v1673_v31 = vmax.f32 %v2613_v14, 0.0 }
 0x4f8   : > { %v1387_v32 = vpop.permute.xlu1 %1386  ;;  %v1385_v27 = vpop.permute.xlu0 %1384 }
 0x4f9   : > { %v1389_v15 = vrot.slane %v1387_v32, 4  ;;  %v1388_v33 = vrot.slane %v1385_v27, 4  ;;  %v1395_v16 = vadd.f32 %v1387_v32, %v1357_v59 }
 0x4fb   : > { %v1390_v43 = vsel %vm244_vm6, %v1388_v33, %v1389_v15 }
 0x4fc   : > { %v1444_v2 = vpop.permute.xlu1 %1443  ;;  %v1442_v30 = vpop.permute.xlu0 %1441  ;;  %v1391_v35 = vsel %vm246_vm1, %v1385_v27, %v1390_v43 }
 0x4fd   : > { %v1446_v25 = vrot.slane %v1444_v2, 4  ;;  %v1445_v36 = vrot.slane %v1442_v30, 4  ;;  %v1394_v42 = vadd.f32 %v1391_v35, %v2662_v7  ;;  %v1452_v47 = vadd.f32 %v1444_v2, %v1395_v16 }
 0x4fe   : > { %v1674_v16 = vmax.f32 %v2649_v39, 0.0  ;;  %v1729_v39 = vmax.f32 %v2652_v44, 0.0 }
 0x4ff   : > { %v1447_v34 = vsel %vm244_vm6, %v1445_v36, %v1446_v25  ;;  %v1677_v25 = vcombine.high %v1673_v31, %v1673_v31 }
 0x500   : > { %v1448_v40 = vsel %vm307_vm7, %v1442_v30, %v1447_v34  ;;  %v1499_v41 = vpop.permute.xlu1 %1498  ;;  %v1497_v17 = vpop.permute.xlu0 %1496 }
 0x501   : > { %v1501_v45 = vrot.slane %v1499_v41, 4  ;;  %v1500_v37 = vrot.slane %v1497_v17, 4  ;;  %v1451_v6 = vadd.f32 %v1448_v40, %v1394_v42  ;;  %v1507_v50 = vadd.f32 %v1499_v41, %v1452_v47 }
 0x502   : > { %v1679_v14 = vrot.slane %v1677_v25, 3  ;;  %v1680_v42 = vrot.slane %v1674_v16, 3  ;;  %v1587_v47 = vrot.slane %v2677_v13, 3 }
 0x503   : > { %v1502_v49 = vsel %vm244_vm6, %v1500_v37, %v1501_v45  ;;  %v1537_v59 = vadd.f32 %v1532_v46, %v1507_v50  ;;  %vm2778_vm6 = vcmask 769024  }
 0x504   : > { %v1503_v51 = vsel %vm365_vm8, %v1497_v17, %v1502_v49  ;;  %v1572_v10 = vpop.permute.xlu1 %1571  ;;  %v1663_v52 = vpop.permute.xlu0 %1662  ;;  %vm2779_vm7 = vmmov %vm2778_vm6 }
 0x505   : > { %v1506_v38 = vadd.f32 %v1503_v51, %v1451_v6  ;;  %v1575_v54 = vrot.slane %v1572_v10, 4  ;;  %v1666_v5 = vrot.slane %v1663_v52, 4 }
 0x507   : > { %v1536_v1 = vadd.f32 %v1533_v56, %v1506_v38  ;;  %v1576_v58 = vsel %vm440_vm9, %v1575_v54, %v1572_v10  ;;  %v1577_v7 = vsel %vm440_vm9, %v1575_v54, %v1574_v29  ;;  %v1667_v60 = vsel %vm534_vm11, %v1666_v5, %v1663_v52 }
 0x508   : > { %v1630_v61 = vpop.permute.xlu1 %1629  ;;  %v1628_v62 = vpop.permute.xlu0 %1627  ;;  %v1581_v9 = vadd.f32 %v1577_v7, %v1537_v59  ;;  %vm2780_vm9 = vcmask 130048   ;;  %v1643_v10 = vrot.slane %v2682_v20, 7  ;;  %v1730_v52 = vmax.f32 %v2660_v48, 0.0  ;;  %v2736_v59 = vld [vmem:[%s2769_s2 + $0x10] sm:$0xff] }
 0x509   : > { %v1580_v4 = vadd.f32 %v1576_v58, %v1536_v1  ;;  %v1631_v8 = vrot.slane %v1628_v62, 4  ;;  %v1733_v38 = vcombine.high %v1729_v39, %v1729_v39  ;;  %v1678_v54 = vrot.slane %v1673_v31, 3 }
 0x50a   : > { %v1736_v7 = vrot.slane %v1730_v52, 7 }
 0x50b   : > { %v1632_v11 = vsel %vm498_vm10, %v1631_v8, %v1628_v62  ;;  %v1633_v12 = vsel %vm498_vm10, %v1631_v8, %v1630_v61  ;;  %vm2781_vm10 = vmmov %vm2780_vm9  ;;  %v1735_v58 = vrot.slane %v1733_v38, 7  ;;  %v1825_v62 = vcombine.high %v2736_v59, %v2736_v59 }
 0x50c   : > { %v1636_v24 = vadd.f32 %v1632_v11, %v1580_v4  ;;  %v1665_v0 = vpop.permute.xlu1 %1664  ;;  %v1637_v18 = vadd.f32 %v1633_v12, %v1581_v9  ;;  %v1719_v19 = vpop.permute.xlu0 %1718  ;;  %v1734_v4 = vrot.slane %v1729_v39, 7 }
 0x50d   : > { %v1668_v21 = vsel %vm534_vm11, %v1666_v5, %v1665_v0  ;;  %v1722_v63 = vrot.slane %v1719_v19, 4  ;;  %vm1826_vm11 = vcmask 39936  }
 0x50e   : > { %v1671_v22 = vadd.f32 %v1667_v60, %v1636_v24  ;;  %v1672_v3 = vadd.f32 %v1668_v21, %v1637_v18  ;;  %2003 = vmatprep.mubr.msk.f32.mxu0 %vm1826_vm11, %v1825_v62 }
 0x50f   : > { %v1723_v57 = vsel %vm2778_vm6, %v1722_v63, %v1719_v19 }
 0x510   : > { %v1721_v23 = vpop.permute.xlu1 %1720  ;;  %v1761_v26 = vpop.permute.xlu0 %1760  ;;  %v1727_v32 = vadd.f32 %v1723_v57, %v1671_v22 }
 0x511   : > { %v1724_v28 = vsel %vm2779_vm7, %v1722_v63, %v1721_v23  ;;  %v1762_v29 = vrot.slane %v1761_v26, 4 }
 0x512   : > { %v1728_v27 = vadd.f32 %v1724_v28, %v1672_v3 }
 0x513   : > { %v1763_v15 = vsel %vm205_vm5, %v1762_v29, %v1761_v26 }
 0x514   : > { %v1766_v33 = vmul.f32 %v1763_v15, %v1727_v32  ;;  %v1767_v43 = vmul.f32 %v1762_v29, %v1728_v27  ;;  %v1595_v2 = vpop.permute.xlu0 %1594  ;;  %v1407_v30 = vpop.permute.xlu1 %1406 }
 0x516   : > { %v1770_v36 = vcombine.high %v1766_v33, %v1766_v33  ;;  %v1771_v35 = vrot.slane %v1766_v33, 3  ;;  %v1773_v34 = vrot.slane %v1767_v43, 3 }
 0x518   : > { %v1651_v40 = vpop.permute.xlu0 %1650  ;;  %1774 = vrot.lane.b32.xlu0 %v1771_v35, %s2118_s7  ;;  %v1369_v41 = vpop.permute.xlu1 %1368  ;;  %1778 = vrot.lane.b32.xlu1 %v1773_v34, %s2118_s7  ;;  %v1772_v17 = vrot.slane %v1770_v36, 3 }
 0x51c   : > { %v1409_v45 = vpop.permute.xlu0 %1408  ;;  %1776 = vrot.lane.b32.xlu0 %v1772_v17, %s2118_s7  ;;  %v1462_v37 = vpop.permute.xlu1 %1461  ;;  %1683 = vrot.lane.b32.xlu1 %v1679_v14, %s2121_s10  ;;  %s170_s7 = scalar_lea.vmem %s2770_s3, %s2006_s26 }
 0x51d   : > { %v1411_v46 = vsel %vm2780_vm9, %v1407_v30, %v1409_v45 }
 0x51e   : > { %1415 = vst [vmem:[#allocation2 + $0xd8] ss:$-12 sps:$4 sm:$0xe1] %v1411_v46  }
 0x520   : > { %v1405_v6 = vpop.permute.xlu0 %1404  ;;  %1685 = vrot.lane.b32.xlu0 %v1680_v42, %s2121_s10  ;;  %1590 = vrot.lane.b32.xlu1 %v1587_v47, %s2116_s5  ;;  %v1371_v49 = vpop.permute.xlu1 %1370 }
 0x521   : > { %v1410_v50 = vsel %vm2781_vm10, %v1405_v6, %v1407_v30  ;;  %v1374_v51 = vsel %vm227_vm4, %v1369_v41, %v1371_v49 }
 0x522   : > { %1414 = vst [vmem:[#allocation2 + $0xd0] ss:$-12 sps:$4 sm:$0xe1] %v1410_v50   ;;  %1378 = vst [vmem:[#allocation2 + $0xc0] sm:$0x1e] %v1374_v51 }
 0x524   : > { %v1373_v44 = vpop.permute.xlu0 %1372  ;;  %1646 = vrot.lane.b32.xlu0 %v1643_v10, %s2114_s30  ;;  %1681 = vrot.lane.b32.xlu1 %v1678_v54, %s2121_s10  ;;  %v1464_v13 = vpop.permute.xlu1 %1463 }
 0x525   : > { %v1375_v56 = vsel %vm227_vm4, %v1371_v49, %v1373_v44  ;;  %v1467_v1 = vsel %vm327_vm3, %v1462_v37, %v1464_v13 }
 0x526   : > { %1379 = vst [vmem:[#allocation2 + $0xc8] sm:$0x1e] %v1375_v56  ;;  %1471 = vst [vmem:[#allocation2 + $0xd0] sm:$0x1e] %v1467_v1 }
 0x528   : > { %v1466_v20 = vpop.permute.xlu0 %1465  ;;  %1739 = vrot.lane.b32.xlu0 %v1735_v58, %s2119_s8  ;;  %1741 = vrot.lane.b32.xlu1 %v1736_v7, %s2119_s8  ;;  %v1519_v48 = vpop.permute.xlu1 %1518 }
 0x529   : > { %v1468_v61 = vsel %vm327_vm3, %v1464_v13, %v1466_v20 }
 0x52a   : > { %1472 = vst [vmem:[#allocation2 + $0xd8] sm:$0x1e] %v1468_v61 }
 0x52c   : > { %v1521_v5 = vpop.permute.xlu0 %1520  ;;  %1737 = vrot.lane.b32.xlu0 %v1734_v4, %s2119_s8  ;;  %v1593_v8 = vpop.permute.xlu1 %1592 }
 0x52d   : > { %v1523_v9 = vsel %vm385_vm2, %v1519_v48, %v1521_v5  ;;  %v1597_v11 = vsel %vm246_vm1, %v1593_v8, %v1595_v2 }
 0x52e   : > { %1527 = vst [vmem:[#allocation2 + $0xe8] ss:$-12 sps:$4 sm:$0xe1] %v1523_v9   ;;  %1601 = vst [vmem:[#allocation2 + $0xf8] ss:$-12 sps:$4 sm:$0xe1] %v1597_v11  }
 0x530   : > { %v1517_v12 = vpop.permute.xlu0 %1516  ;;  %v1649_v24 = vpop.permute.xlu1 %1648 }
 0x531   : > { %v1522_v0 = vsel %vm385_vm2, %v1517_v12, %v1519_v48  ;;  %v1653_v18 = vsel %vm292_vm0, %v1649_v24, %v1651_v40 }
 0x532   : > { %1526 = vst [vmem:[#allocation2 + $0xe0] ss:$-12 sps:$4 sm:$0xe1] %v1522_v0   ;;  %1657 = vst [vmem:[#allocation2 + $0xf8] sm:$0x1e] %v1653_v18 }
 0x535   : > { %v1817_v25 = vld [vmem:[#allocation2 + $0xd8] sm:$0xff]  ;;  %v1819_v42 = vld [vmem:[#allocation2 + $0xe8] sm:$0xff] }
 0x539   : > { %v1816_v14 = vld [vmem:[#allocation2 + $0xd0] sm:$0xff] }
 0x58a   : > { %v1775_v19 = vpop.permute.xlu0 %1774  ;;  %v1779_v60 = vpop.permute.xlu1 %1778 }
 0x58e   : > { %v1777_v21 = vpop.permute.xlu0 %1776  ;;  %v1684_v63 = vpop.permute.xlu1 %1683 }
 0x58f   : > { %v1780_v22 = vsel %vm227_vm4, %v1775_v19, %v1777_v21  ;;  %v1781_v57 = vsel %vm227_vm4, %v1777_v21, %v1779_v60 }
 0x590   : > { %1784 = vst [vmem:[#allocation2 + $0xc0] ss:$-12 sps:$4 sm:$0xe1] %v1780_v22   ;;  %1785 = vst [vmem:[#allocation2 + $0xc8] ss:$-12 sps:$4 sm:$0xe1] %v1781_v57  }
 0x592   : > { %v1686_v3 = vpop.permute.xlu0 %1685  ;;  %v1591_v23 = vpop.permute.xlu1 %1590 }
 0x593   : > { %v1688_v26 = vsel %vm365_vm8, %v1684_v63, %v1686_v3  ;;  %v1596_v28 = vsel %vm246_vm1, %v1591_v23, %v1593_v8 }
 0x594   : > { %1692 = vst [vmem:[#allocation2 + $0x108] ss:$-12 sps:$4 sm:$0xe1] %v1688_v26   ;;  %1600 = vst [vmem:[#allocation2 + $0xf0] ss:$-12 sps:$4 sm:$0xe1] %v1596_v28  }
 0x596   : > { %v1647_v29 = vpop.permute.xlu0 %1646  ;;  %v1682_v31 = vpop.permute.xlu1 %1681 }
 0x597   : > { %v1652_v32 = vsel %vm292_vm0, %v1647_v29, %v1649_v24  ;;  %v1687_v27 = vsel %vm365_vm8, %v1682_v31, %v1684_v63  ;;  %v1813_v15 = vld [vmem:[#allocation2 + $0xb8] sm:$0xff]  ;;  %v1812_v33 = vld [vmem:[#allocation2 + $0xb0] sm:$0xff]  ;;  %v1815_v43 = vld [vmem:[#allocation2 + $0xc8] sm:$0xff]  ;;  %vm2782_vm0 = vcmask 1044480  }
 0x598   : > { %1656 = vst [vmem:[#allocation2 + $0xf0] sm:$0x1e] %v1652_v32  ;;  %1691 = vst [vmem:[#allocation2 + $0x100] ss:$-12 sps:$4 sm:$0xe1] %v1687_v27   ;;  %v2068_v2 = vpack.c.bf16 %v1813_v15, %v2598_v53  ;;  %v2070_v30 = vpack.c.bf16 %v1812_v33, %v2602_v55  ;;  %v2072_v34 = vpack.c.bf16 %v1817_v25, %v1815_v43  ;;  %v1814_v16 = vld [vmem:[#allocation2 + $0xc0] sm:$0xff] }
 0x599   : > { %v2074_v17 = vpack.c.bf16 %v1816_v14, %v1814_v16  ;;  %vm2783_vm1 = vmmov %vm2782_vm0 }
 0x59a   : > { %v1740_v36 = vpop.permute.xlu0 %1739  ;;  %v1742_v35 = vpop.permute.xlu1 %1741  ;;  %2069 = vmatprep.subr.bf16.mxu0 %v2068_v2 }
 0x59b   : > { %v1744_v40 = vsel %vm205_vm5, %v1740_v36, %v1742_v35  ;;  %2071 = vmatpush1.bf16.msra.mxu0 %v2070_v30  ;;  %v1821_v41 = vld [vmem:[#allocation2 + $0xf8] sm:$0xff]  ;;  %v1818_v37 = vld [vmem:[#allocation2 + $0xe0] sm:$0xff] }
 0x59c   : > { %1748 = vst [vmem:[#allocation2 + $0x108] sm:$0x1e] %v1744_v40  ;;  %2073 = vmatprep.subr.bf16.mxu0 %v2072_v34  ;;  %v2076_v53 = vpack.c.bf16 %v1821_v41, %v1819_v42 }
 0x59e   : > { %v1738_v45 = vpop.permute.xlu0 %1737 }
 0x59f   : > { %v1743_v55 = vsel %vm205_vm5, %v1738_v45, %v1740_v36  ;;  %2075 = vmatpush1.bf16.msra.mxu0 %v2074_v17  ;;  %v1820_v46 = vld [vmem:[#allocation2 + $0xf0] sm:$0xff] }
 0x5a0   : > { %1747 = vst [vmem:[#allocation2 + $0x100] sm:$0x1e] %v1743_v55  ;;  %2077 = vmatprep.subr.bf16.mxu0 %v2076_v53  ;;  %v2078_v47 = vpack.c.bf16 %v1820_v46, %v1818_v37 }
 0x5a3   : > { %2079 = vmatpush1.bf16.msra.mxu0 %v2078_v47  ;;  %v1823_v39 = vld [vmem:[#allocation2 + $0x108] sm:$0x1f] }
 0x5a4   : > { %2001 = vmatprep.subr.msk.mxu0 %vm2782_vm0, %v1823_v39 }
 0x5a7   : > { %v1822_v6 = vld [vmem:[#allocation2 + $0x100] sm:$0x1f] }
 0x5a8   : > { %2002 = vmatpush1.msk.msra.mxu0 %vm2783_vm1, %v1822_v6 }
 0x5a9   : > { %1900 = vmatmul.mubr.f32.vlgmr.msra.gmra.mrb[0].mxu0 %v2736_v59 }
 0x67c   : > { %v1901_v49 = vpop.f32.mrb[0].mxu0 }
 0x67d   : > { %v1903_v50 = vpop.f32.mrb[1].mxu0 }
 0x67e   : > { %v1908_v51 = vcombine.low %v1901_v49, %v1903_v50 }
 0x680   : > { %1910 = vst [vmem:[%s170_s7] sm:$0xff] %v1908_v51 }
 0x681 PF: > { %s13_s12 = sadd.s32 1, %s2111_s12  }
 0x682   : > { %p10_p4 = scmp.ge.s32.totalorder %s13_s12, 4  }
 0x684   :  { %12 = sbr.rel (!%p10_p4) target bundleno = 1 (0x1), region = 70 }

</bundles_post_ra>
